<compile_context>
chip_gen: v7x
topology: tpu7x:2x2x1
jax: 0.10.0
libtpu: 0.0.40
codegen_flags: <defaults>
</compile_context>

<pallas_src>
import jax
import jax.numpy as jnp
from jax.experimental import pallas as pl
from jax.experimental.pallas import tpu as pltpu


def _conv1x1_kernel(x_ref, w_ref, o_ref):
    # x_ref: (Cin, HW) f32 -> cast to bf16 in-kernel (VPU cast is free: the
    # kernel is writeback-bound, not compute-bound).
    # w_ref: (tc, Cin) bf16.  o_ref: (tc, HW) f32.
    x_bf16 = x_ref[...].astype(jnp.bfloat16)
    o_ref[...] = jnp.dot(
        w_ref[...], x_bf16, preferred_element_type=jnp.float32
    ).astype(o_ref.dtype)


def _pick_cout_tile(cout):
    """Cout tile: multiple of 8 (sublane), as large as possible while keeping
    >=2 blocks on the parallel c axis (v7x has 2 TensorCores)."""
    if cout % 16 == 0:
        return cout // 2          # e.g. 288 -> 144: 2-step grid, both TCs busy
    for tc in (256, 192, 144, 128, 96, 64, 32, 16, 8):
        if tc < cout:
            return tc
    return cout                   # tiny Cout: single full-extent block


def conv2d_1x1(x_nchw, weight_oihw):
    """1x1 stride-1 conv, no bias. x: (N, Cin, H, W) f32; weight: (Cout, Cin, 1, 1)."""
    N, Cin, H, W = x_nchw.shape
    Cout = weight_oihw.shape[0]
    HW = H * W

    # Native layout, no transposes. x stays f32 (cast happens in-kernel);
    # the weight cast is tiny (~28 KB) so it stays in the wrapper.
    xm = x_nchw.reshape(N, Cin, HW)
    wm = weight_oihw.reshape(Cout, Cin).astype(jnp.bfloat16)

    tc = _pick_cout_tile(Cout)
    grid = (N, pl.cdiv(Cout, tc))

    out_dtype = x_nchw.dtype
    # x is fetched once per batch (its block index is constant across c),
    # weights once, output written once.
    cost = pl.CostEstimate(
        flops=2 * N * Cout * Cin * HW,
        transcendentals=0,
        bytes_accessed=(
            xm.size * xm.dtype.itemsize
            + wm.size * wm.dtype.itemsize
            + N * Cout * HW * jnp.dtype(out_dtype).itemsize
        ),
    )

    # TODO(synk): if the consumer (BN/SiLU in EfficientNet) can be fused here or
    # can take bf16, emit bf16 / fused output to halve the dominant writeback.
    out = pl.pallas_call(
        _conv1x1_kernel,
        out_shape=jax.ShapeDtypeStruct((N, Cout, HW), out_dtype),
        grid=grid,
        in_specs=[
            # x: (N, Cin, HW) f32 -> kernel sees (Cin, HW); batch dim squeezed.
            # Block index is constant in c -> Pallas keeps x resident per batch.
            pl.BlockSpec((None, Cin, HW), lambda n, c: (n, 0, 0)),
            # weight: (Cout, Cin) bf16 -> kernel sees (tc, Cin).
            pl.BlockSpec((tc, Cin), lambda n, c: (c, 0)),
        ],
        # output: (N, Cout, HW) -> (tc, HW) tiles, lane axis = full HW.
        out_specs=pl.BlockSpec((None, tc, HW), lambda n, c: (n, c, 0)),
        compiler_params=pltpu.CompilerParams(
            dimension_semantics=("parallel", "parallel")
        ),
        cost_estimate=cost,
    )(xm, wm)

    # Free reshape (no transpose): (N, Cout, HW) is already NCHW-flattened.
    return out.reshape(N, Cout, H, W)


if __name__ == "__main__":
    key = jax.random.PRNGKey(0)
    kx, kw = jax.random.split(key)

    # Shapes from the module: Conv2d(48, 288, 1x1, bias=False) on (1, 48, 56, 56).
    N, Cin, H, W = 1, 48, 56, 56
    Cout = 288

    x = jax.random.normal(kx, (N, Cin, H, W), dtype=jnp.float32)
    weight = jax.random.normal(kw, (Cout, Cin, 1, 1), dtype=jnp.float32) * 0.05

    out = jax.block_until_ready(conv2d_1x1(x, weight))

    # Reference mirrors the kernel's bf16 input/weight rounding, f32 accumulation.
    xr = x.astype(jnp.bfloat16).astype(jnp.float32)
    wr = weight.reshape(Cout, Cin).astype(jnp.bfloat16).astype(jnp.float32)
    ref = jnp.einsum("nchw,oc->nohw", xr, wr)

    assert out.shape == (N, Cout, H, W), out.shape
    assert out.dtype == x.dtype, out.dtype
    assert jnp.allclose(out, ref, atol=5e-3, rtol=5e-3), float(
        jnp.max(jnp.abs(out - ref))
    )

    print("KERNEL_OK")
</pallas_src>

<mosaic_0001>
module attributes {stable_mosaic.version = 11 : i64} {
  func.func @_conv1x1_kernel(%arg0: i32, %arg1: i32, %arg2: memref<1x48x3136xf32, #tpu.memory_space<vmem>>, %arg3: memref<144x48xbf16, #tpu.memory_space<vmem>>, %arg4: memref<1x144x3136xf32, #tpu.memory_space<vmem>>) attributes {dimension_semantics = [#tpu.dimension_semantics<parallel>, #tpu.dimension_semantics<parallel>], iteration_bounds = array<i64: 1, 2>, scalar_prefetch = 0 : i64, scratch_operands = 0 : i64, tpu.core_type = #tpu.core_type<tc>, window_params = [{transform_indices = @transform_0, window_bounds = array<i64: 1, 48, 3136>}, {transform_indices = @transform_1, window_bounds = array<i64: 144, 48>}, {transform_indices = @transform_2, window_bounds = array<i64: 1, 144, 3136>}]} {
    %c0 = arith.constant 0 : index
    %c0_0 = arith.constant 0 : index
    %c0_1 = arith.constant 0 : index
    %0 = vector.load %arg2[%c0, %c0_0, %c0_1] : memref<1x48x3136xf32, #tpu.memory_space<vmem>>, vector<1x48x3136xf32>
    %1 = vector.shape_cast %0 : vector<1x48x3136xf32> to vector<48x3136xf32>
    %2 = arith.truncf %1 : vector<48x3136xf32> to vector<48x3136xbf16>
    %c0_2 = arith.constant 0 : index
    %c0_3 = arith.constant 0 : index
    %3 = vector.load %arg3[%c0_2, %c0_3] : memref<144x48xbf16, #tpu.memory_space<vmem>>, vector<144x48xbf16>
    %cst = arith.constant dense<0.000000e+00> : vector<144x3136xf32>
    %4 = tpu.matmul %3, %2, %cst {dimension_numbers = #tpu.dot_dimension_numbers<[1], [0], [0], [1], [0, 0, 1, 1], [], []>} : vector<144x48xbf16>, vector<48x3136xbf16>, vector<144x3136xf32> -> vector<144x3136xf32>
    %c0_4 = arith.constant 0 : index
    %c0_5 = arith.constant 0 : index
    %c0_6 = arith.constant 0 : index
    %5 = vector.load %arg4[%c0_4, %c0_5, %c0_6] : memref<1x144x3136xf32, #tpu.memory_space<vmem>>, vector<1x144x3136xf32>
    %6 = vector.shape_cast %5 : vector<1x144x3136xf32> to vector<144x3136xf32>
    %7 = vector.shape_cast %4 : vector<144x3136xf32> to vector<1x144x3136xf32>
    tpu.vector_store %arg4[%c0_4, %c0_5, %c0_6], %7 {strides = array<i32>} : memref<1x144x3136xf32, #tpu.memory_space<vmem>>, vector<1x144x3136xf32>,
    return
  }
  func.func @transform_0(%arg0: i32, %arg1: i32) -> (i32, i32, i32) {
    %c0_i32 = arith.constant 0 : i32
    %c0_i32_0 = arith.constant 0 : i32
    %c0_i32_1 = arith.constant 0 : i32
    return %arg0, %c0_i32, %c0_i32_0 : i32, i32, i32
  }
  func.func @transform_1(%arg0: i32, %arg1: i32) -> (i32, i32) {
    %c0_i32 = arith.constant 0 : i32
    %c0_i32_0 = arith.constant 0 : i32
    return %arg1, %c0_i32 : i32, i32
  }
  func.func @transform_2(%arg0: i32, %arg1: i32) -> (i32, i32, i32) {
    %c0_i32 = arith.constant 0 : i32
    %c0_i32_0 = arith.constant 0 : i32
    return %arg0, %arg1, %c0_i32 : i32, i32, i32
  }
}

</mosaic_0001>

<bundles_post_ra>
// kernel: tpu_custom_call.1
= control target key start
LH: loop header
LB: loop body
LE: loop exit
PB: predicated region body
PF: predicated region fallthrough
CT: control target
= control target key end

     0   :  { %7 = vsyncpa [#allocation3], 0  ;;  %s4108_s0 = inlined_call_operand.hbm [shape: f32[1,48,3136], index: 0, kind: input, shape index: {}]   ;;  %s4109_s1 = inlined_call_operand.vmem [shape: bf16[288,48], index: 1, kind: input, shape index: {}]   ;;  %s4110_s2 = inlined_call_operand.hbm [shape: f32[1,288,3136], index: 2, kind: output, shape index: {}]  }
   0x1   :  { %8 = vsyncpa [#allocation4], 0 }
   0x2   :  { %10 = vsyncpa [#allocation4 + $0x1], 0  ;;  %s3062_s9 = smov 0   ;;  %s3064_s10 = smov 0  }
   0x3   :  { %s3066_s11 = smov 0   ;;  %s3068_s12 = smov 0  }
   0x4   :  { %s3070_s13 = smov 0   ;;  %s3072_s14 = smov 0  }
   0x5 LB: > { %s2635_s15 = sadd.s32 4294967295, %s3036_s14   ;;  %s2636_s16 = sadd.s32 4294967294, %s3036_s14   ;;  %s3036_s14 = sphi %s3072_s14, %s16_s14   ;;  %s3032_s13 = sphi %s3070_s13, %s4128_s13   ;;  %s3028_s12 = sphi %s3068_s12, %s4127_s12   ;;  %s3024_s11 = sphi %s3066_s11, %s4126_s11   ;;  %s3020_s10 = sphi %s3064_s10, %s4125_s10   ;;  %s3016_s9 = sphi %s3062_s9, %s4124_s9  }
   0x6   : > { %s25_s17 = sadd.s32 1, %s3032_s13  ;;  %s89_s18 = sadd.s32 1, %s3024_s11 }
   0x7   : > { %p26_p0 = scmp.ge.s32.totalorder %s25_s17, 2  ;;  %p99_p1 = scmp.ne.s32.totalorder %s3024_s11, %s3020_s10 }
   0x8   : > { %p100_p2 = scmp.eq.s32.totalorder %s2635_s15, 1  ;;  %p105_p3 = scmp.ne.s32.totalorder %s3020_s10, %s3016_s9 }
   0x9   : > { %s4130_s17 = smov (%p26_p0, %s25_s17), 0  ;;  %p106_p5 = scmp.eq.s32.totalorder %s2636_s16, 1 }
   0xa   : > { %p3102_p4 = por %p100_p2, %p99_p1  ;;  %s85_s20 = ssub.s32 %s3032_s13, %s4130_s17 }
   0xb   : > { %p2637_p6 = scmp.ge.s32.totalorder %s3036_s14, 1  ;;  %p87_p7 = scmp.eq.s32.totalorder %s85_s20, 0 }
   0xc   : > { %s4115_s19 = scalar_select %p3102_p4, 1, 0 }
   0xd   : > { %p3109_p8 = por %p106_p5, %p105_p3  ;;  %p113_p9 = scmp.lt.s32.totalorder %s3036_s14, 3 }
   0xe   : > { %s3115_s22 = scalar_select %p87_p7, %s3024_s11, %s89_s18  }
   0xf   : > { %s4116_s21 = scalar_select %p3109_p8, 1, 0 }
  0x10   : > { %p3117_p10 = pnand %p2637_p6, %p113_p9  ;;  %p3121_p11 = scmp.eq.s32.totalorder %s2635_s15, 0 }
  0x11   : > { %s3038_s25 = smov [#allocation2]   ;;  %s2926_s30 = scalar_lea.hbm %s4108_s0, 19200 }
  0x12   : > { %s4117_s23 = scalar_select %p3117_p10, 1, 0 }
  0x13   : > { %s4118_s24 = scalar_select %p3121_p11, 1, 0 }
  0x14   : > { %p2840_p12 = pneg %p3117_p10  ;;  %s128_s26 = sshll.u32 %s3038_s25, 4  ;;  %s129_s26 = int_to_ptr.vmem [resolvable:$true] %s128_s26 }
  0x15   : > { %p2927_p0 = scmp.ne.s32.totalorder %s4108_s0, %s2926_s30  ;;  %p2933_p5 = scmp.lt.u32.totalorder %s2926_s30, %s4108_s0 }
  0x16   : > { %p3129_p13 = pnand %p3121_p11, %p2840_p12 }
  0x18   : > { %p2928_p1 = pneg %p3129_p13 }
  0x1a   : > { %p2929_p2 = pnand %p2928_p1, %p2927_p0 }
  0x1c   : > { %p2930_p3 = pneg %p2929_p2 }
  0x1e   : > { %p2935_p6 = pnand %p2933_p5, %p2930_p3 }
  0x20   : > { %2938 = shalt.err (!%p2935_p6)
}
  0x21   : > { %s2939_s7 = scalar_lea.vmem %s129_s26, 19200  ;;  %p2947_p8 = scmp.lt.s32.totalorder %s129_s26, %s129_s26 }
  0x22   : > { %p2940_p7 = scmp.ne.s32.totalorder %s129_s26, %s2939_s7  ;;  %p2948_p4 = scmp.lt.s32.totalorder %s2939_s7, %s2939_s7 }
  0x24   : > { %p2942_p9 = pnand %p2940_p7, %p2928_p1  ;;  %p2949_p11 = por %p2948_p4, %p2947_p8 }
  0x26   : > { %p2943_p12 = pneg %p2942_p9 }
  0x28   : > { %p2950_p10 = pnand %p2949_p11, %p2943_p12 }
  0x2a   : > { %2953 = shalt.err (!%p2950_p10)
}
  0x2b   : > { %s3039_s8 = smov 3200   ;;  %s3040_s15 = smov 200  }
  0x2c   : > { %2843 = dma.hbm_to_vmem [thread:$0]  (!%p3129_p13), %s4108_s0, 19200, %s129_s26, [#allocation3], %s3039_s8, %s3039_s8, %s3040_s15  }
  0x2d   : > { %p4120_p0 = scmp.ne.s32.totalorder %s4117_s23, 0 }
  0x2e   : > { %p4121_p2 = scmp.ne.s32.totalorder (!%p4120_p0), %s4118_s24, 0 }
  0x2f   : > { %153 = sbr.rel (%p4120_p0) target bundleno = 763 (0x2fb), region = 28 }
  0x36   : > { %3007 = dma.done.wait (%p4121_p2), [#allocation3], 19200  }
  0x37   : > { %3009 = vsyncadd (%p4121_p2), [#allocation3], 4294948096  ;;  %s175_s20 = smul.u32 18, %s3028_s12  ;;  %v3041_v0 = vmov 0   ;;  %v184_v1 = vld [vmem:[#allocation2 + $0x8] sm:$0xff]  ;;  %v209_v2 = vld [vmem:[#allocation2 + $0xd0] sm:$0xff] }
  0x38   : > { %531 = vmatprep.mubr.bf16.mxu0 %v3041_v0  ;;  %581 = vmatprep.mubr.bf16.mxu1 %v3041_v0  ;;  %v183_v3 = vld [vmem:[#allocation2] sm:$0xff]  ;;  %v334_v4 = vpack.c.bf16 %v209_v2, %v184_v1  ;;  %v208_v5 = vld [vmem:[#allocation2 + $0xc8] sm:$0xff]  ;;  %v234_v6 = vld [vmem:[#allocation2 + $0x198] sm:$0xff]  ;;  %vm471_vm0 = vcmask 392192   ;;  %s172_s27 = sand.u32 1, %s3020_s10   ;;  %vm3043_vm1 = vmmov 0  }
  0x39   : > { %p176_p4 = scmp.lt.s32.totalorder %s175_s20, 35  ;;  %v259_v7 = vld [vmem:[#allocation2 + $0x260] sm:$0xff]  ;;  %v333_v8 = vpack.c.bf16 %v208_v5, %v183_v3  ;;  %v233_v10 = vld [vmem:[#allocation2 + $0x190] sm:$0xff]  ;;  %v258_v11 = vld [vmem:[#allocation2 + $0x258] sm:$0xff]  ;;  %s2832_s28 = smul.u32 3600, %s172_s27  ;;  %vm2104_vm2 = vcmask 523264  }
  0x3a   : > { %v359_v9 = vpack.c.bf16 %v259_v7, %v234_v6  ;;  %v284_v12 = vld [vmem:[#allocation2 + $0x328] sm:$0xff]  ;;  %499 = vmatprep.subr.bf16.mxu0 %v334_v4  ;;  %2826 = vmatprep.subr.bf16.mxu1 %v334_v4  ;;  %v309_v13 = vld [vmem:[#allocation2 + $0x3f0] sm:$0xff]  ;;  %v358_v14 = vpack.c.bf16 %v258_v11, %v233_v10  ;;  %v283_v16 = vld [vmem:[#allocation2 + $0x320] sm:$0xff]  ;;  %s2850_s30 = smul.u32 57600, %s3028_s12  ;;  %s4062_s12 = scalar_lea.sflag [#allocation4], %s172_s27 }
  0x3b   : > { %s4132_s20 = smov (!%p176_p4, %s175_s20), 35  ;;  %500 = vmatpush1.bf16.msra.mxu0 %v333_v8  ;;  %2829 = vmatpush1.bf16.msra.mxu1 %v333_v8  ;;  %v384_v15 = vpack.c.bf16 %v309_v13, %v284_v12  ;;  %v308_v17 = vld [vmem:[#allocation2 + $0x3e8] sm:$0xff]  ;;  %v213_v19 = vld [vmem:[#allocation2 + $0xf0] sm:$0xff]  ;;  %v186_v20 = vld [vmem:[#allocation2 + $0x18] sm:$0xff]  ;;  %s3355_s29 = scalar_lea.vmem [#allocation5], %s2832_s28 }
  0x3c   : > { %s2642_s23 = sshll.u32 %s4132_s20, 2  ;;  %501 = vmatprep.subr.bf16.mxu0 %v359_v9  ;;  %2827 = vmatprep.subr.bf16.mxu1 %v359_v9  ;;  %v188_v18 = vld [vmem:[#allocation2 + $0x28] sm:$0xff]  ;;  %v211_v21 = vld [vmem:[#allocation2 + $0xe0] sm:$0xff]  ;;  %v383_v22 = vpack.c.bf16 %v308_v17, %v283_v16  ;;  %v185_v29 = vld [vmem:[#allocation2 + $0x10] sm:$0xff]  ;;  %s2548_s3 = sshll.u32 %s3355_s29, 4  ;;  %s4054_s3 = int_to_ptr.vmem [resolvable:$true] %s2548_s3 }
  0x3d   : > { %s3161_s26 = scalar_lea.vmem %s4109_s1, %s2642_s23  ;;  %v187_v23 = vld [vmem:[#allocation2 + $0x20] sm:$0xff]  ;;  %v338_v25 = vpack.c.bf16 %v213_v19, %v188_v18  ;;  %v212_v26 = vld [vmem:[#allocation2 + $0xe8] sm:$0xff]  ;;  %v336_v28 = vpack.c.bf16 %v211_v21, %v186_v20  ;;  %v210_v30 = vld [vmem:[#allocation2 + $0xd8] sm:$0xff]  ;;  %s4052_s6 = scalar_lea.hbm %s4110_s2, %s2850_s30 }
  0x3e   : > { %v3164_v24 = vld [vmem:[%s3161_s26] sm:$0xff]   ;;  %v3167_v27 = vld [vmem:[%s3161_s26 + $0x28] sm:$0xff]   ;;  %v238_v31 = vld [vmem:[#allocation2 + $0x1b8] sm:$0xff]  ;;  %v337_v34 = vpack.c.bf16 %v212_v26, %v187_v23  ;;  %v335_v36 = vpack.c.bf16 %v210_v30, %v185_v29  ;;  %s2954_s7 = scalar_lea.vmem %s4054_s3, 57600  ;;  %p4122_p10 = scmp.ne.s32.totalorder %s4115_s19, 0 }
  0x3f   : > { %502 = vmatpush1.bf16.msra.mxu0 %v358_v14  ;;  %2830 = vmatpush1.bf16.msra.mxu1 %v358_v14  ;;  %v263_v32 = vld [vmem:[#allocation2 + $0x280] sm:$0xff]  ;;  %v237_v33 = vld [vmem:[#allocation2 + $0x1b0] sm:$0xff]  ;;  %v262_v35 = vld [vmem:[#allocation2 + $0x278] sm:$0xff]  ;;  %p2955_p8 = scmp.ne.s32.totalorder %s4054_s3, %s2954_s7  ;;  %s3044_s8 = smov [#allocation5]  }
  0x40   : > { %503 = vmatprep.subr.bf16.mxu0 %v384_v15  ;;  %2828 = vmatprep.subr.bf16.mxu1 %v384_v15  ;;  %v236_v37 = vld [vmem:[#allocation2 + $0x1a8] sm:$0xff]  ;;  %v261_v38 = vld [vmem:[#allocation2 + $0x270] sm:$0xff]  ;;  %v235_v39 = vld [vmem:[#allocation2 + $0x1a0] sm:$0xff]  ;;  %v363_v40 = vpack.c.bf16 %v263_v32, %v238_v31  ;;  %v362_v43 = vpack.c.bf16 %v262_v35, %v237_v33  ;;  %s2958_s15 = sshll.u32 %s3044_s8, 4  ;;  %s2959_s15 = int_to_ptr.vmem [resolvable:$false] %s2958_s15 }
  0x41   : > { %v361_v41 = vpack.c.bf16 %v261_v38, %v236_v37  ;;  %v260_v42 = vld [vmem:[#allocation2 + $0x268] sm:$0xff]  ;;  %v313_v45 = vld [vmem:[#allocation2 + $0x410] sm:$0xff]  ;;  %v287_v50 = vld [vmem:[#allocation2 + $0x340] sm:$0xff]  ;;  %p2956_p11 = pnand %p2955_p8, %p4122_p10  ;;  %s2960_s16 = scalar_lea.vmem %s2959_s15, 115200 }
  0x42   : > { %v288_v44 = vld [vmem:[#allocation2 + $0x348] sm:$0xff]  ;;  %v3179_v47 = vld [vmem:[%s3161_s26 + $0x30] sm:$0xff]   ;;  %v360_v48 = vpack.c.bf16 %v260_v42, %v235_v39  ;;  %v286_v52 = vld [vmem:[#allocation2 + $0x338] sm:$0xff]  ;;  %p2961_p1 = scmp.lt.s32.totalorder %s4054_s3, %s2959_s15  ;;  %p2962_p3 = scmp.lt.s32.totalorder %s2960_s16, %s2954_s7 }
  0x43   : > { %504 = vmatpush1.bf16.msra.mxu0 %v383_v22  ;;  %2831 = vmatpush1.bf16.msra.mxu1 %v383_v22  ;;  %v3175_v46 = vld [vmem:[%s3161_s26 + $0x8] sm:$0xff]   ;;  %v388_v49 = vpack.c.bf16 %v313_v45, %v288_v44  ;;  %v311_v53 = vld [vmem:[#allocation2 + $0x400] sm:$0xff]  ;;  %v285_v54 = vld [vmem:[#allocation2 + $0x330] sm:$0xff]  ;;  %p2957_p13 = pneg %p2956_p11 }
  0x44   : > { %745 = vmatprep.subr.bf16.mxu0 %v338_v25  ;;  %622 = vmatprep.subr.bf16.mxu1 %v336_v28  ;;  %v312_v51 = vld [vmem:[#allocation2 + $0x408] sm:$0xff]  ;;  %v310_v55 = vld [vmem:[#allocation2 + $0x3f8] sm:$0xff]  ;;  %v386_v56 = vpack.c.bf16 %v311_v53, %v286_v52  ;;  %v215_v60 = vld [vmem:[#allocation2 + $0x100] sm:$0xff]  ;;  %p2963_p5 = por %p2962_p3, %p2961_p1 }
  0x45   : > { %v387_v57 = vpack.c.bf16 %v312_v51, %v287_v50  ;;  %v385_v58 = vpack.c.bf16 %v310_v55, %v285_v54  ;;  %v190_v59 = vld [vmem:[#allocation2 + $0x38] sm:$0xff]  ;;  %v192_v62 = vld [vmem:[#allocation2 + $0x48] sm:$0xff]  ;;  %v217_v63 = vld [vmem:[#allocation2 + $0x110] sm:$0xff] }
  0x46   : > { %2652 = vmatmul.mubr.msk.bf16.vlgmr.msra.gmra.mrb[0].mxu0 %vm471_vm0, %v3164_v24  ;;  %2657 = vmatmul.mubr.msk.bf16.vlgmr.msra.gmra.mrb[0].mxu1 %vm471_vm0, %v3167_v27  ;;  %v340_v61 = vpack.c.bf16 %v215_v60, %v190_v59  ;;  %v342_v1 = vpack.c.bf16 %v217_v63, %v192_v62  ;;  %v3188_v2 = vld [vmem:[%s3161_s26 + $0x10] sm:$0xff]   ;;  %v3191_v3 = vld [vmem:[%s3161_s26 + $0x38] sm:$0xff]   ;;  %v3203_v5 = vld [vmem:[%s3161_s26 + $0x40] sm:$0xff]   ;;  %p2964_p6 = pnand %p2963_p5, %p2957_p13 }
  0x47   : > { %746 = vmatpush1.bf16.msra.mxu0 %v337_v34  ;;  %541 = vmatprep.mubr.bf16.mxu0 %v3041_v0  ;;  %v3200_v4 = vld [vmem:[%s3161_s26 + $0x18] sm:$0xff]   ;;  %v189_v6 = vld [vmem:[#allocation2 + $0x30] sm:$0xff]  ;;  %v240_v8 = vld [vmem:[#allocation2 + $0x1c8] sm:$0xff] }
  0x48   : > { %623 = vmatpush1.bf16.msra.mxu1 %v335_v36  ;;  %591 = vmatprep.mubr.bf16.mxu1 %v3041_v0  ;;  %v214_v7 = vld [vmem:[#allocation2 + $0xf8] sm:$0xff]  ;;  %v265_v9 = vld [vmem:[#allocation2 + $0x290] sm:$0xff]  ;;  %v3212_v10 = vld [vmem:[%s3161_s26 + $0x20] sm:$0xff]  }
  0x49   : > { %747 = vmatprep.subr.bf16.mxu0 %v363_v40  ;;  %624 = vmatprep.subr.bf16.mxu1 %v361_v41  ;;  %v339_v11 = vpack.c.bf16 %v214_v7, %v189_v6  ;;  %v365_v12 = vpack.c.bf16 %v265_v9, %v240_v8  ;;  %v239_v13 = vld [vmem:[#allocation2 + $0x1c0] sm:$0xff]  ;;  %v264_v14 = vld [vmem:[#allocation2 + $0x288] sm:$0xff]  ;;  %v290_v15 = vld [vmem:[#allocation2 + $0x358] sm:$0xff] }
  0x4a   : > { %v315_v16 = vld [vmem:[#allocation2 + $0x420] sm:$0xff]  ;;  %v364_v17 = vpack.c.bf16 %v264_v14, %v239_v13  ;;  %v216_v19 = vld [vmem:[#allocation2 + $0x108] sm:$0xff]  ;;  %v242_v21 = vld [vmem:[#allocation2 + $0x1d8] sm:$0xff] }
  0x4b   : > { %748 = vmatpush1.bf16.msra.mxu0 %v362_v43  ;;  %v191_v18 = vld [vmem:[#allocation2 + $0x40] sm:$0xff]  ;;  %v390_v20 = vpack.c.bf16 %v315_v16, %v290_v15  ;;  %v289_v23 = vld [vmem:[#allocation2 + $0x350] sm:$0xff]  ;;  %v314_v25 = vld [vmem:[#allocation2 + $0x418] sm:$0xff] }
  0x4c   : > { %625 = vmatpush1.bf16.msra.mxu1 %v360_v48  ;;  %749 = vmatprep.subr.bf16.mxu0 %v388_v49  ;;  %v267_v22 = vld [vmem:[#allocation2 + $0x2a0] sm:$0xff]  ;;  %v341_v26 = vpack.c.bf16 %v216_v19, %v191_v18  ;;  %v194_v28 = vld [vmem:[#allocation2 + $0x58] sm:$0xff]  ;;  %v241_v31 = vld [vmem:[#allocation2 + $0x1d0] sm:$0xff]  ;;  %v389_v33 = vpack.c.bf16 %v314_v25, %v289_v23 }
  0x4d   : > { %626 = vmatprep.subr.bf16.mxu1 %v386_v56  ;;  %v219_v29 = vld [vmem:[#allocation2 + $0x120] sm:$0xff]  ;;  %v367_v30 = vpack.c.bf16 %v267_v22, %v242_v21  ;;  %v266_v32 = vld [vmem:[#allocation2 + $0x298] sm:$0xff]  ;;  %v292_v34 = vld [vmem:[#allocation2 + $0x368] sm:$0xff] }
  0x4e   : > { %2653 = vmatmul.mubr.msk.bf16.gmra.mrb[4].mxu0 %vm471_vm0, %v3175_v46  ;;  %2658 = vmatmul.mubr.msk.bf16.gmra.mrb[4].mxu1 %vm471_vm0, %v3179_v47  ;;  %v317_v35 = vld [vmem:[#allocation2 + $0x430] sm:$0xff]  ;;  %v344_v36 = vpack.c.bf16 %v219_v29, %v194_v28  ;;  %v366_v37 = vpack.c.bf16 %v266_v32, %v241_v31  ;;  %v291_v39 = vld [vmem:[#allocation2 + $0x360] sm:$0xff]  ;;  %v316_v40 = vld [vmem:[#allocation2 + $0x428] sm:$0xff] }
  0x4f   : > { %551 = vmatprep.mubr.bf16.mxu0 %v3041_v0  ;;  %601 = vmatprep.mubr.bf16.mxu1 %v3041_v0  ;;  %v392_v38 = vpack.c.bf16 %v317_v35, %v292_v34  ;;  %v196_v41 = vld [vmem:[#allocation2 + $0x68] sm:$0xff]  ;;  %v221_v42 = vld [vmem:[#allocation2 + $0x130] sm:$0xff]  ;;  %v391_v43 = vpack.c.bf16 %v316_v40, %v291_v39  ;;  %v218_v48 = vld [vmem:[#allocation2 + $0x118] sm:$0xff] }
  0x50   : > { %750 = vmatpush1.bf16.msra.mxu0 %v387_v57  ;;  %627 = vmatpush1.bf16.msra.mxu1 %v385_v58  ;;  %v346_v44 = vpack.c.bf16 %v221_v42, %v196_v41  ;;  %v193_v45 = vld [vmem:[#allocation2 + $0x50] sm:$0xff]  ;;  %v244_v49 = vld [vmem:[#allocation2 + $0x1e8] sm:$0xff]  ;;  %v243_v53 = vld [vmem:[#allocation2 + $0x1e0] sm:$0xff] }
  0x51   : > { %868 = vmatprep.subr.bf16.mxu1 %v340_v61  ;;  %991 = vmatprep.subr.bf16.mxu0 %v342_v1  ;;  %v269_v50 = vld [vmem:[#allocation2 + $0x2b0] sm:$0xff]  ;;  %v343_v51 = vpack.c.bf16 %v218_v48, %v193_v45  ;;  %v268_v54 = vld [vmem:[#allocation2 + $0x2a8] sm:$0xff]  ;;  %v294_v55 = vld [vmem:[#allocation2 + $0x378] sm:$0xff] }
  0x52   : > { %v369_v52 = vpack.c.bf16 %v269_v50, %v244_v49  ;;  %v319_v56 = vld [vmem:[#allocation2 + $0x440] sm:$0xff]  ;;  %v368_v57 = vpack.c.bf16 %v268_v54, %v243_v53  ;;  %v220_v59 = vld [vmem:[#allocation2 + $0x128] sm:$0xff]  ;;  %v246_v61 = vld [vmem:[#allocation2 + $0x1f8] sm:$0xff] }
  0x53   : > { %v195_v58 = vld [vmem:[#allocation2 + $0x60] sm:$0xff]  ;;  %v394_v60 = vpack.c.bf16 %v319_v56, %v294_v55  ;;  %v293_v63 = vld [vmem:[#allocation2 + $0x370] sm:$0xff]  ;;  %v318_v1 = vld [vmem:[#allocation2 + $0x438] sm:$0xff] }
  0x54   : > { %v271_v62 = vld [vmem:[#allocation2 + $0x2c0] sm:$0xff]  ;;  %v345_v6 = vpack.c.bf16 %v220_v59, %v195_v58  ;;  %v198_v7 = vld [vmem:[#allocation2 + $0x78] sm:$0xff]  ;;  %v393_v13 = vpack.c.bf16 %v318_v1, %v293_v63  ;;  %v296_v14 = vld [vmem:[#allocation2 + $0x388] sm:$0xff] }
  0x55   : > { %v223_v8 = vld [vmem:[#allocation2 + $0x140] sm:$0xff]  ;;  %v371_v9 = vpack.c.bf16 %v271_v62, %v246_v61  ;;  %v321_v15 = vld [vmem:[#allocation2 + $0x450] sm:$0xff]  ;;  %v200_v21 = vld [vmem:[#allocation2 + $0x88] sm:$0xff] }
  0x56   : > { %2654 = vmatmul.mubr.msk.bf16.gmra.mrb[8].mxu0 %vm471_vm0, %v3188_v2  ;;  %2659 = vmatmul.mubr.msk.bf16.gmra.mrb[8].mxu1 %vm471_vm0, %v3191_v3  ;;  %v348_v16 = vpack.c.bf16 %v223_v8, %v198_v7  ;;  %v396_v18 = vpack.c.bf16 %v321_v15, %v296_v14  ;;  %v295_v19 = vld [vmem:[#allocation2 + $0x380] sm:$0xff]  ;;  %v225_v22 = vld [vmem:[#allocation2 + $0x150] sm:$0xff]  ;;  %v222_v28 = vld [vmem:[#allocation2 + $0x138] sm:$0xff] }
  0x57   : > { %561 = vmatprep.mubr.bf16.mxu0 %v3041_v0  ;;  %611 = vmatprep.mubr.bf16.mxu1 %v3041_v0  ;;  %v350_v25 = vpack.c.bf16 %v225_v22, %v200_v21  ;;  %v248_v29 = vld [vmem:[#allocation2 + $0x208] sm:$0xff]  ;;  %v298_v35 = vld [vmem:[#allocation2 + $0x398] sm:$0xff]  ;;  %v275_v42 = vld [vmem:[#allocation2 + $0x2e0] sm:$0xff] }
  0x58   : > { %v272_v34 = vld [vmem:[#allocation2 + $0x2c8] sm:$0xff]  ;;  %v250_v41 = vld [vmem:[#allocation2 + $0x218] sm:$0xff]  ;;  %v227_v49 = vld [vmem:[#allocation2 + $0x160] sm:$0xff] }
  0x59   : > { %v224_v39 = vld [vmem:[#allocation2 + $0x148] sm:$0xff]  ;;  %v202_v48 = vld [vmem:[#allocation2 + $0x98] sm:$0xff]  ;;  %v375_v50 = vpack.c.bf16 %v275_v42, %v250_v41  ;;  %v325_v55 = vld [vmem:[#allocation2 + $0x470] sm:$0xff] }
  0x5a   : > { %v300_v54 = vld [vmem:[#allocation2 + $0x3a8] sm:$0xff]  ;;  %v352_v56 = vpack.c.bf16 %v227_v49, %v202_v48  ;;  %v299_v59 = vld [vmem:[#allocation2 + $0x3a0] sm:$0xff]  ;;  %v229_v62 = vld [vmem:[#allocation2 + $0x170] sm:$0xff] }
  0x5b   : > { %v400_v58 = vpack.c.bf16 %v325_v55, %v300_v54  ;;  %v204_v61 = vld [vmem:[#allocation2 + $0xa8] sm:$0xff]  ;;  %v251_v54 = vld [vmem:[#allocation2 + $0x220] sm:$0xff] }
  0x5c   : > { %v354_v1 = vpack.c.bf16 %v229_v62, %v204_v61  ;;  %v276_v55 = vld [vmem:[#allocation2 + $0x2e8] sm:$0xff] }
  0x5e   : > { %2655 = vmatmul.mubr.msk.bf16.gmra.mrb[12].mxu0 %vm471_vm0, %v3200_v4  ;;  %2660 = vmatmul.mubr.msk.bf16.gmra.mrb[12].mxu1 %vm471_vm0, %v3203_v5 }
  0x5f   : > { %571 = vmatprep.mubr.bf16.mxu0 %v3041_v0  ;;  %654 = vmatprep.mubr.bf16.mxu1 %v3041_v0 }
  0x66   : > { %2656 = vmatmul.mubr.msk.bf16.gmra.mrb[16].mxu0 %vm471_vm0, %v3212_v10  ;;  %2661 = vmatmul.mubr.msk.bf16.vlgmr.msra.gmra.mrb[16].mxu1 %vm471_vm0, %v3164_v24 }
  0x67   : > { %777 = vmatprep.mubr.bf16.mxu0 %v3041_v0  ;;  %869 = vmatpush1.bf16.msra.mxu1 %v339_v11  ;;  %v245_v11 = vld [vmem:[#allocation2 + $0x1f0] sm:$0xff] }
  0x68   : > { %664 = vmatprep.mubr.bf16.mxu1 %v3041_v0  ;;  %870 = vmatprep.subr.bf16.mxu1 %v365_v12  ;;  %v270_v12 = vld [vmem:[#allocation2 + $0x2b8] sm:$0xff] }
  0x6b   : > { %871 = vmatpush1.bf16.msra.mxu1 %v364_v17  ;;  %v370_v17 = vpack.c.bf16 %v270_v12, %v245_v11 }
  0x6c   : > { %872 = vmatprep.subr.bf16.mxu1 %v390_v20  ;;  %v320_v20 = vld [vmem:[#allocation2 + $0x448] sm:$0xff] }
  0x6d   : > { %v395_v23 = vpack.c.bf16 %v320_v20, %v295_v19 }
  0x6e   : > { %2670 = vmatmul.mubr.msk.bf16.vlgmr.msra.gmra.mrb[20].mxu0 %vm471_vm0, %v3164_v24  ;;  %2662 = vmatmul.mubr.msk.bf16.gmra.mrb[20].mxu1 %vm471_vm0, %v3175_v46 }
  0x6f   : > { %992 = vmatpush1.bf16.msra.mxu0 %v341_v26  ;;  %787 = vmatprep.mubr.bf16.mxu0 %v3041_v0  ;;  %v197_v26 = vld [vmem:[#allocation2 + $0x70] sm:$0xff] }
  0x70   : > { %674 = vmatprep.mubr.bf16.mxu1 %v3041_v0  ;;  %993 = vmatprep.subr.bf16.mxu0 %v367_v30  ;;  %v273_v30 = vld [vmem:[#allocation2 + $0x2d0] sm:$0xff]  ;;  %v347_v31 = vpack.c.bf16 %v222_v28, %v197_v26 }
  0x71   : > { %873 = vmatpush1.bf16.msra.mxu1 %v389_v33  ;;  %v373_v32 = vpack.c.bf16 %v273_v30, %v248_v29  ;;  %v247_v33 = vld [vmem:[#allocation2 + $0x200] sm:$0xff] }
  0x72   : > { %1114 = vmatprep.subr.bf16.mxu1 %v344_v36  ;;  %v323_v36 = vld [vmem:[#allocation2 + $0x460] sm:$0xff] }
  0x73   : > { %994 = vmatpush1.bf16.msra.mxu0 %v366_v37  ;;  %v372_v37 = vpack.c.bf16 %v272_v34, %v247_v33  ;;  %v398_v40 = vpack.c.bf16 %v323_v36, %v298_v35 }
  0x74   : > { %995 = vmatprep.subr.bf16.mxu0 %v392_v38  ;;  %v199_v38 = vld [vmem:[#allocation2 + $0x80] sm:$0xff] }
  0x75   : > { %v349_v45 = vpack.c.bf16 %v224_v39, %v199_v38  ;;  %v201_v39 = vld [vmem:[#allocation2 + $0x90] sm:$0xff] }
  0x76   : > { %2671 = vmatmul.mubr.msk.bf16.gmra.mrb[24].mxu0 %vm471_vm0, %v3175_v46  ;;  %2663 = vmatmul.mubr.msk.bf16.gmra.mrb[24].mxu1 %vm471_vm0, %v3188_v2 }
  0x77   : > { %797 = vmatprep.mubr.bf16.mxu0 %v3041_v0  ;;  %684 = vmatprep.mubr.bf16.mxu1 %v3041_v0 }
  0x78   : > { %996 = vmatpush1.bf16.msra.mxu0 %v391_v43  ;;  %v297_v43 = vld [vmem:[#allocation2 + $0x390] sm:$0xff] }
  0x79   : > { %1237 = vmatprep.subr.bf16.mxu0 %v346_v44  ;;  %v322_v44 = vld [vmem:[#allocation2 + $0x458] sm:$0xff] }
  0x7a   : > { %v397_v53 = vpack.c.bf16 %v322_v44, %v297_v43  ;;  %v252_v43 = vld [vmem:[#allocation2 + $0x228] sm:$0xff]  ;;  %v277_v44 = vld [vmem:[#allocation2 + $0x2f0] sm:$0xff] }
  0x7e   : > { %2672 = vmatmul.mubr.msk.bf16.gmra.mrb[28].mxu0 %vm471_vm0, %v3188_v2  ;;  %2664 = vmatmul.mubr.msk.bf16.gmra.mrb[28].mxu1 %vm471_vm0, %v3200_v4 }
  0x7f   : > { %807 = vmatprep.mubr.bf16.mxu0 %v3041_v0  ;;  %694 = vmatprep.mubr.bf16.mxu1 %v3041_v0 }
  0x86   : > { %2673 = vmatmul.mubr.msk.bf16.gmra.mrb[32].mxu0 %vm471_vm0, %v3200_v4  ;;  %2665 = vmatmul.mubr.msk.bf16.gmra.mrb[32].mxu1 %vm471_vm0, %v3212_v10 }
  0x87   : > { %817 = vmatprep.mubr.bf16.mxu0 %v3041_v0  ;;  %704 = vmatprep.mubr.bf16.mxu1 %v3041_v0 }
  0x8e   : > { %2674 = vmatmul.mubr.msk.bf16.gmra.mrb[36].mxu0 %vm471_vm0, %v3212_v10  ;;  %2666 = vmatmul.mubr.msk.bf16.gmra.mrb[36].mxu1 %vm471_vm0, %v3167_v27 }
  0x8f   : > { %827 = vmatprep.mubr.bf16.mxu0 %v3041_v0  ;;  %714 = vmatprep.mubr.bf16.mxu1 %v3041_v0 }
  0x96   : > { %2675 = vmatmul.mubr.msk.bf16.gmra.mrb[40].mxu0 %vm471_vm0, %v3167_v27  ;;  %2667 = vmatmul.mubr.msk.bf16.gmra.mrb[40].mxu1 %vm471_vm0, %v3179_v47 }
  0x97   : > { %837 = vmatprep.mubr.bf16.mxu0 %v3041_v0  ;;  %724 = vmatprep.mubr.bf16.mxu1 %v3041_v0 }
  0x9e   : > { %2676 = vmatmul.mubr.msk.bf16.gmra.mrb[44].mxu0 %vm471_vm0, %v3179_v47  ;;  %2668 = vmatmul.mubr.msk.bf16.gmra.mrb[44].mxu1 %vm471_vm0, %v3191_v3 }
  0x9f   : > { %847 = vmatprep.mubr.bf16.mxu0 %v3041_v0  ;;  %734 = vmatprep.mubr.bf16.mxu1 %v3041_v0 }
  0xa6   : > { %2677 = vmatmul.mubr.msk.bf16.gmra.mrb[48].mxu0 %vm471_vm0, %v3191_v3  ;;  %2669 = vmatmul.mubr.msk.bf16.gmra.mrb[48].mxu1 %vm471_vm0, %v3203_v5 }
  0xa7   : > { %857 = vmatprep.mubr.bf16.mxu0 %v3041_v0  ;;  %900 = vmatprep.mubr.bf16.mxu1 %v3041_v0 }
  0xae   : > { %2678 = vmatmul.mubr.msk.bf16.gmra.mrb[52].mxu0 %vm471_vm0, %v3203_v5  ;;  %2679 = vmatmul.mubr.msk.bf16.vlgmr.msra.gmra.mrb[52].mxu1 %vm471_vm0, %v3164_v24 }
  0xaf   : > { %1023 = vmatprep.mubr.bf16.mxu0 %v3041_v0  ;;  %1115 = vmatpush1.bf16.msra.mxu1 %v343_v51  ;;  %v249_v51 = vld [vmem:[#allocation2 + $0x210] sm:$0xff] }
  0xb0   : > { %910 = vmatprep.mubr.bf16.mxu1 %v3041_v0  ;;  %1116 = vmatprep.subr.bf16.mxu1 %v369_v52  ;;  %v274_v52 = vld [vmem:[#allocation2 + $0x2d8] sm:$0xff] }
  0xb3   : > { %1117 = vmatpush1.bf16.msra.mxu1 %v368_v57  ;;  %v374_v57 = vpack.c.bf16 %v274_v52, %v249_v51 }
  0xb4   : > { %1118 = vmatprep.subr.bf16.mxu1 %v394_v60  ;;  %v324_v60 = vld [vmem:[#allocation2 + $0x468] sm:$0xff] }
  0xb5   : > { %v399_v63 = vpack.c.bf16 %v324_v60, %v299_v59  ;;  %v203_v59 = vld [vmem:[#allocation2 + $0xa0] sm:$0xff]  ;;  %v228_v60 = vld [vmem:[#allocation2 + $0x168] sm:$0xff] }
  0xb6   : > { %2688 = vmatmul.mubr.msk.bf16.vlgmr.msra.gmra.mrb[56].mxu0 %vm471_vm0, %v3164_v24  ;;  %2680 = vmatmul.mubr.msk.bf16.gmra.mrb[56].mxu1 %vm471_vm0, %v3175_v46 }
  0xb7   : > { %1238 = vmatpush1.bf16.msra.mxu0 %v345_v6  ;;  %1033 = vmatprep.mubr.bf16.mxu0 %v3041_v0 }
  0xb8   : > { %920 = vmatprep.mubr.bf16.mxu1 %v3041_v0  ;;  %1239 = vmatprep.subr.bf16.mxu0 %v371_v9 }
  0xb9   : > { %1119 = vmatpush1.bf16.msra.mxu1 %v393_v13 }
  0xba   : > { %1360 = vmatprep.subr.bf16.mxu1 %v348_v16 }
  0xbb   : > { %1240 = vmatpush1.bf16.msra.mxu0 %v370_v17 }
  0xbc   : > { %1241 = vmatprep.subr.bf16.mxu0 %v396_v18 }
  0xbe   : > { %2689 = vmatmul.mubr.msk.bf16.gmra.mrb[60].mxu0 %vm471_vm0, %v3175_v46  ;;  %2681 = vmatmul.mubr.msk.bf16.gmra.mrb[60].mxu1 %vm471_vm0, %v3188_v2 }
  0xbf   : > { %1043 = vmatprep.mubr.bf16.mxu0 %v3041_v0  ;;  %930 = vmatprep.mubr.bf16.mxu1 %v3041_v0 }
  0xc0   : > { %1242 = vmatpush1.bf16.msra.mxu0 %v395_v23 }
  0xc1   : > { %1483 = vmatprep.subr.bf16.mxu0 %v350_v25 }
  0xc6   : > { %2690 = vmatmul.mubr.msk.bf16.gmra.mrb[64].mxu0 %vm471_vm0, %v3188_v2  ;;  %2682 = vmatmul.mubr.msk.bf16.gmra.mrb[64].mxu1 %vm471_vm0, %v3200_v4 }
  0xc7   : > { %1053 = vmatprep.mubr.bf16.mxu0 %v3041_v0  ;;  %940 = vmatprep.mubr.bf16.mxu1 %v3041_v0 }
  0xce   : > { %2691 = vmatmul.mubr.msk.bf16.gmra.mrb[68].mxu0 %vm471_vm0, %v3200_v4  ;;  %2683 = vmatmul.mubr.msk.bf16.gmra.mrb[68].mxu1 %vm471_vm0, %v3212_v10 }
  0xcf   : > { %1063 = vmatprep.mubr.bf16.mxu0 %v3041_v0  ;;  %950 = vmatprep.mubr.bf16.mxu1 %v3041_v0 }
  0xd6   : > { %2692 = vmatmul.mubr.msk.bf16.gmra.mrb[72].mxu0 %vm471_vm0, %v3212_v10  ;;  %2684 = vmatmul.mubr.msk.bf16.gmra.mrb[72].mxu1 %vm471_vm0, %v3167_v27 }
  0xd7   : > { %1073 = vmatprep.mubr.bf16.mxu0 %v3041_v0  ;;  %960 = vmatprep.mubr.bf16.mxu1 %v3041_v0 }
  0xde   : > { %2693 = vmatmul.mubr.msk.bf16.gmra.mrb[76].mxu0 %vm471_vm0, %v3167_v27  ;;  %2685 = vmatmul.mubr.msk.bf16.gmra.mrb[76].mxu1 %vm471_vm0, %v3179_v47 }
  0xdf   : > { %1083 = vmatprep.mubr.bf16.mxu0 %v3041_v0  ;;  %970 = vmatprep.mubr.bf16.mxu1 %v3041_v0 }
  0xe6   : > { %2694 = vmatmul.mubr.msk.bf16.gmra.mrb[80].mxu0 %vm471_vm0, %v3179_v47  ;;  %2686 = vmatmul.mubr.msk.bf16.gmra.mrb[80].mxu1 %vm471_vm0, %v3191_v3 }
  0xe7   : > { %1093 = vmatprep.mubr.bf16.mxu0 %v3041_v0  ;;  %980 = vmatprep.mubr.bf16.mxu1 %v3041_v0 }
  0xee   : > { %2695 = vmatmul.mubr.msk.bf16.gmra.mrb[84].mxu0 %vm471_vm0, %v3191_v3  ;;  %2687 = vmatmul.mubr.msk.bf16.gmra.mrb[84].mxu1 %vm471_vm0, %v3203_v5 }
  0xef   : > { %1103 = vmatprep.mubr.bf16.mxu0 %v3041_v0  ;;  %1146 = vmatprep.mubr.bf16.mxu1 %v3041_v0 }
  0xf6   : > { %2696 = vmatmul.mubr.msk.bf16.gmra.mrb[88].mxu0 %vm471_vm0, %v3203_v5  ;;  %2697 = vmatmul.mubr.msk.bf16.vlgmr.msra.gmra.mrb[88].mxu1 %vm471_vm0, %v3164_v24 }
  0xf7   : > { %1269 = vmatprep.mubr.bf16.mxu0 %v3041_v0  ;;  %1361 = vmatpush1.bf16.msra.mxu1 %v347_v31 }
  0xf8   : > { %1156 = vmatprep.mubr.bf16.mxu1 %v3041_v0  ;;  %1362 = vmatprep.subr.bf16.mxu1 %v373_v32 }
  0xfb   : > { %1363 = vmatpush1.bf16.msra.mxu1 %v372_v37 }
  0xfc   : > { %1364 = vmatprep.subr.bf16.mxu1 %v398_v40  ;;  %v226_v40 = vld [vmem:[#allocation2 + $0x158] sm:$0xff] }
  0xfe   : > { %2706 = vmatmul.mubr.msk.bf16.vlgmr.msra.gmra.mrb[92].mxu0 %vm471_vm0, %v3164_v24  ;;  %2698 = vmatmul.mubr.msk.bf16.gmra.mrb[92].mxu1 %vm471_vm0, %v3175_v46 }
  0xff   : > { %1484 = vmatpush1.bf16.msra.mxu0 %v349_v45  ;;  %1279 = vmatprep.mubr.bf16.mxu0 %v3041_v0 }
 0x100   : > { %1166 = vmatprep.mubr.bf16.mxu1 %v3041_v0  ;;  %1485 = vmatprep.subr.bf16.mxu0 %v375_v50  ;;  %v351_v50 = vpack.c.bf16 %v226_v40, %v201_v39  ;;  %v3042_v39 = vmov 0.0  }
 0x101   : > { %1365 = vmatpush1.bf16.msra.mxu1 %v397_v53  ;;  %v377_v53 = vpack.c.bf16 %v277_v44, %v252_v43 }
 0x102   : > { %1606 = vmatprep.subr.bf16.mxu1 %v352_v56  ;;  %v302_v56 = vld [vmem:[#allocation2 + $0x3b8] sm:$0xff] }
 0x103   : > { %1486 = vmatpush1.bf16.msra.mxu0 %v374_v57  ;;  %v327_v57 = vld [vmem:[#allocation2 + $0x480] sm:$0xff] }
 0x104   : > { %1487 = vmatprep.subr.bf16.mxu0 %v400_v58  ;;  %v376_v58 = vpack.c.bf16 %v276_v55, %v251_v54  ;;  %v402_v61 = vpack.c.bf16 %v327_v57, %v302_v56 }
 0x106   : > { %2707 = vmatmul.mubr.msk.bf16.gmra.mrb[96].mxu0 %vm471_vm0, %v3175_v46  ;;  %2699 = vmatmul.mubr.msk.bf16.gmra.mrb[96].mxu1 %vm471_vm0, %v3188_v2 }
 0x107   : > { %1289 = vmatprep.mubr.bf16.mxu0 %v3041_v0  ;;  %1176 = vmatprep.mubr.bf16.mxu1 %v3041_v0 }
 0x108   : > { %1488 = vmatpush1.bf16.msra.mxu0 %v399_v63 }
 0x109   : > { %1729 = vmatprep.subr.bf16.mxu0 %v354_v1  ;;  %v254_v1 = vld [vmem:[#allocation2 + $0x238] sm:$0xff] }
 0x10e   : > { %2708 = vmatmul.mubr.msk.bf16.gmra.mrb[100].mxu0 %vm471_vm0, %v3188_v2  ;;  %2700 = vmatmul.mubr.msk.bf16.gmra.mrb[100].mxu1 %vm471_vm0, %v3200_v4 }
 0x10f   : > { %1299 = vmatprep.mubr.bf16.mxu0 %v3041_v0  ;;  %1186 = vmatprep.mubr.bf16.mxu1 %v3041_v0 }
 0x116   : > { %2709 = vmatmul.mubr.msk.bf16.gmra.mrb[104].mxu0 %vm471_vm0, %v3200_v4  ;;  %2701 = vmatmul.mubr.msk.bf16.gmra.mrb[104].mxu1 %vm471_vm0, %v3212_v10 }
 0x117   : > { %1309 = vmatprep.mubr.bf16.mxu0 %v3041_v0  ;;  %1196 = vmatprep.mubr.bf16.mxu1 %v3041_v0 }
 0x119   : > { %v533_v6 = vpop.f32.mrb[0].mxu0  ;;  %v583_v7 = vpop.f32.mrb[0].mxu1 }
 0x11a   : > { %2080 = vst [vmem:[%s3355_s29] sm:$0xff] %v533_v6  ;;  %v535_v8 = vpop.f32.mrb[1].mxu0  ;;  %2331 = vst [vmem:[%s3355_s29 + $0x7d0] sm:$0xff] %v583_v7  ;;  %v585_v9 = vpop.f32.mrb[1].mxu1 }
 0x11b   : > { %2081 = vst [vmem:[%s3355_s29 + $0x8] sm:$0xff] %v535_v8  ;;  %v537_v11 = vpop.f32.mrb[2].mxu0  ;;  %2332 = vst [vmem:[%s3355_s29 + $0x7d8] sm:$0xff] %v585_v9  ;;  %v587_v12 = vpop.f32.mrb[2].mxu1  ;;  %v301_v8 = vld [vmem:[#allocation2 + $0x3b0] sm:$0xff]  ;;  %v326_v9 = vld [vmem:[#allocation2 + $0x478] sm:$0xff] }
 0x11c   : > { %2106 = vst [vmem:[%s3355_s29 + $0xc8] sm:$0xff] %v537_v11  ;;  %v539_v13 = vpop.f32.mrb[3].mxu0  ;;  %2356 = vst [vmem:[%s3355_s29 + $0x898] sm:$0xff] %v587_v12  ;;  %v589_v14 = vpop.f32.mrb[3].mxu1  ;;  %v353_v12 = vpack.c.bf16 %v228_v60, %v203_v59  ;;  %v3495_v60 = vld [vmem:[%s3161_s26 + $0x28] sm:$0xff]  }
 0x11d   : > { %2107 = vst [vmem:[%s3355_s29 + $0xd0] sm:$0xff] %v539_v13  ;;  %2357 = vst [vmem:[%s3355_s29 + $0x8a0] sm:$0xff] %v589_v14  ;;  %v206_v14 = vld [vmem:[#allocation2 + $0xb8] sm:$0xff] }
 0x11e   : > { %2710 = vmatmul.mubr.msk.bf16.gmra.mrb[108].mxu0 %vm471_vm0, %v3212_v10  ;;  %2702 = vmatmul.mubr.msk.bf16.gmra.mrb[108].mxu1 %vm471_vm0, %v3167_v27 }
 0x11f   : > { %1319 = vmatprep.mubr.bf16.mxu0 %v3041_v0  ;;  %1206 = vmatprep.mubr.bf16.mxu1 %v3041_v0 }
 0x121   : > { %v543_v15 = vpop.f32.mrb[4].mxu0  ;;  %v593_v16 = vpop.f32.mrb[4].mxu1 }
 0x122   : > { %2131 = vst [vmem:[%s3355_s29 + $0x190] sm:$0xff] %v543_v15  ;;  %v545_v17 = vpop.f32.mrb[5].mxu0  ;;  %2381 = vst [vmem:[%s3355_s29 + $0x960] sm:$0xff] %v593_v16  ;;  %v595_v18 = vpop.f32.mrb[5].mxu1  ;;  %v231_v15 = vld [vmem:[#allocation2 + $0x180] sm:$0xff] }
 0x123   : > { %2132 = vst [vmem:[%s3355_s29 + $0x198] sm:$0xff] %v545_v17  ;;  %v547_v19 = vpop.f32.mrb[6].mxu0  ;;  %2382 = vst [vmem:[%s3355_s29 + $0x968] sm:$0xff] %v595_v18  ;;  %v597_v20 = vpop.f32.mrb[6].mxu1 }
 0x124   : > { %2156 = vst [vmem:[%s3355_s29 + $0x258] sm:$0xff] %v547_v19  ;;  %v549_v21 = vpop.f32.mrb[7].mxu0  ;;  %2406 = vst [vmem:[%s3355_s29 + $0xa28] sm:$0xff] %v597_v20  ;;  %v599_v22 = vpop.f32.mrb[7].mxu1  ;;  %v253_v19 = vld [vmem:[#allocation2 + $0x230] sm:$0xff]  ;;  %v278_v20 = vld [vmem:[#allocation2 + $0x2f8] sm:$0xff] }
 0x125   : > { %2157 = vst [vmem:[%s3355_s29 + $0x260] sm:$0xff] %v549_v21  ;;  %2407 = vst [vmem:[%s3355_s29 + $0xa30] sm:$0xff] %v599_v22  ;;  %v401_v21 = vpack.c.bf16 %v326_v9, %v301_v8  ;;  %v304_v22 = vld [vmem:[#allocation2 + $0x3c8] sm:$0xff]  ;;  %v3512_v8 = vld [vmem:[%s3161_s26 + $0x30] sm:$0xff]  }
 0x126   : > { %2711 = vmatmul.mubr.msk.bf16.gmra.mrb[112].mxu0 %vm471_vm0, %v3167_v27  ;;  %2703 = vmatmul.mubr.msk.bf16.gmra.mrb[112].mxu1 %vm471_vm0, %v3179_v47 }
 0x127   : > { %1329 = vmatprep.mubr.bf16.mxu0 %v3041_v0  ;;  %1216 = vmatprep.mubr.bf16.mxu1 %v3041_v0 }
 0x129   : > { %v553_v23 = vpop.f32.mrb[8].mxu0  ;;  %v603_v25 = vpop.f32.mrb[8].mxu1 }
 0x12a   : > { %2181 = vst [vmem:[%s3355_s29 + $0x320] sm:$0xff] %v553_v23  ;;  %v555_v26 = vpop.f32.mrb[9].mxu0  ;;  %2431 = vst [vmem:[%s3355_s29 + $0xaf0] sm:$0xff] %v603_v25  ;;  %v605_v28 = vpop.f32.mrb[9].mxu1  ;;  %v329_v23 = vld [vmem:[#allocation2 + $0x490] sm:$0xff]  ;;  %v356_v25 = vpack.c.bf16 %v231_v15, %v206_v14 }
 0x12b   : > { %2182 = vst [vmem:[%s3355_s29 + $0x328] sm:$0xff] %v555_v26  ;;  %v557_v29 = vpop.f32.mrb[10].mxu0  ;;  %2432 = vst [vmem:[%s3355_s29 + $0xaf8] sm:$0xff] %v605_v28  ;;  %v607_v27 = vpop.f32.mrb[10].mxu1  ;;  %v378_v26 = vpack.c.bf16 %v278_v20, %v253_v19  ;;  %v404_v28 = vpack.c.bf16 %v329_v23, %v304_v22 }
 0x12c   : > { %2206 = vst [vmem:[%s3355_s29 + $0x3e8] sm:$0xff] %v557_v29  ;;  %v559_v30 = vpop.f32.mrb[11].mxu0  ;;  %2456 = vst [vmem:[%s3355_s29 + $0xbb8] sm:$0xff] %v607_v27  ;;  %v609_v31 = vpop.f32.mrb[11].mxu1 }
 0x12d   : > { %2207 = vst [vmem:[%s3355_s29 + $0x3f0] sm:$0xff] %v559_v30  ;;  %2457 = vst [vmem:[%s3355_s29 + $0xbc0] sm:$0xff] %v609_v31  ;;  %v328_v30 = vld [vmem:[#allocation2 + $0x488] sm:$0xff] }
 0x12e   : > { %2712 = vmatmul.mubr.msk.bf16.gmra.mrb[116].mxu0 %vm471_vm0, %v3179_v47  ;;  %2704 = vmatmul.mubr.msk.bf16.gmra.mrb[116].mxu1 %vm471_vm0, %v3191_v3 }
 0x12f   : > { %1339 = vmatprep.mubr.bf16.mxu0 %v3041_v0  ;;  %1226 = vmatprep.mubr.bf16.mxu1 %v3041_v0 }
 0x131   : > { %v563_v32 = vpop.f32.mrb[12].mxu0  ;;  %v613_v33 = vpop.f32.mrb[12].mxu1 }
 0x132   : > { %2231 = vst [vmem:[%s3355_s29 + $0x4b0] sm:$0xff] %v563_v32  ;;  %v565_v34 = vpop.f32.mrb[13].mxu0  ;;  %2481 = vst [vmem:[%s3355_s29 + $0xc80] sm:$0xff] %v613_v33  ;;  %v615_v35 = vpop.f32.mrb[13].mxu1 }
 0x133   : > { %2232 = vst [vmem:[%s3355_s29 + $0x4b8] sm:$0xff] %v565_v34  ;;  %v567_v36 = vpop.f32.mrb[14].mxu0  ;;  %2482 = vst [vmem:[%s3355_s29 + $0xc88] sm:$0xff] %v615_v35  ;;  %v617_v47 = vpop.f32.mrb[14].mxu1 }
 0x134   : > { %2256 = vst [vmem:[%s3355_s29 + $0x578] sm:$0xff] %v567_v36  ;;  %v569_v37 = vpop.f32.mrb[15].mxu0  ;;  %2506 = vst [vmem:[%s3355_s29 + $0xd48] sm:$0xff] %v617_v47  ;;  %v619_v38 = vpop.f32.mrb[15].mxu1 }
 0x135   : > { %2257 = vst [vmem:[%s3355_s29 + $0x580] sm:$0xff] %v569_v37  ;;  %2507 = vst [vmem:[%s3355_s29 + $0xd50] sm:$0xff] %v619_v38 }
 0x136   : > { %2713 = vmatmul.mubr.msk.bf16.gmra.mrb[120].mxu0 %vm471_vm0, %v3191_v3  ;;  %2705 = vmatmul.mubr.msk.bf16.gmra.mrb[120].mxu1 %vm471_vm0, %v3203_v5 }
 0x137   : > { %1349 = vmatprep.mubr.bf16.mxu0 %v3041_v0  ;;  %1392 = vmatprep.mubr.bf16.mxu1 %v3041_v0 }
 0x139   : > { %v573_v41 = vpop.f32.mrb[16].mxu0  ;;  %v656_v42 = vpop.f32.mrb[16].mxu1 }
 0x13a   : > { %2281 = vst [vmem:[%s3355_s29 + $0x640] sm:$0xff] %v573_v41  ;;  %v575_v45 = vpop.f32.mrb[17].mxu0  ;;  %2082 = vst [vmem:[%s3355_s29 + $0x10] sm:$0xff] %v656_v42  ;;  %v658_v3 = vpop.f32.mrb[17].mxu1 }
 0x13b   : > { %2282 = vst [vmem:[%s3355_s29 + $0x648] sm:$0xff] %v575_v45  ;;  %v577_v48 = vpop.f32.mrb[18].mxu0  ;;  %2083 = vst [vmem:[%s3355_s29 + $0x18] sm:$0xff] %v658_v3  ;;  %v660_v49 = vpop.f32.mrb[18].mxu1 }
 0x13c   : > { %2306 = vst [vmem:[%s3355_s29 + $0x708] sm:$0xff] %v577_v48  ;;  %v579_v51 = vpop.f32.mrb[19].mxu0  ;;  %2108 = vst [vmem:[%s3355_s29 + $0xd8] sm:$0xff] %v660_v49  ;;  %v662_v52 = vpop.f32.mrb[19].mxu1 }
 0x13d   : > { %2307 = vst [vmem:[%s3355_s29 + $0x710] sm:$0xff] %v579_v51  ;;  %2109 = vst [vmem:[%s3355_s29 + $0xe0] sm:$0xff] %v662_v52 }
 0x13e   : > { %2714 = vmatmul.mubr.msk.bf16.gmra.mrb[124].mxu0 %vm471_vm0, %v3203_v5  ;;  %2715 = vmatmul.mubr.msk.bf16.vlgmr.msra.gmra.mrb[124].mxu1 %vm471_vm0, %v3164_v24  ;;  %v279_v5 = vld [vmem:[#allocation2 + $0x300] sm:$0xff] }
 0x13f   : > { %1515 = vmatprep.mubr.bf16.mxu0 %v3041_v0  ;;  %1607 = vmatpush1.bf16.msra.mxu1 %v351_v50  ;;  %v379_v18 = vpack.c.bf16 %v279_v5, %v254_v1 }
 0x140   : > { %1402 = vmatprep.mubr.bf16.mxu1 %v3041_v0  ;;  %1608 = vmatprep.subr.bf16.mxu1 %v377_v53 }
 0x141   : > { %v779_v62 = vpop.f32.mrb[20].mxu0  ;;  %v666_v63 = vpop.f32.mrb[20].mxu1 }
 0x142   : > { %2084 = vst [vmem:[%s3355_s29 + $0x20] sm:$0xff] %v779_v62  ;;  %v781_v6 = vpop.f32.mrb[21].mxu0  ;;  %2133 = vst [vmem:[%s3355_s29 + $0x1a0] sm:$0xff] %v666_v63  ;;  %v668_v7 = vpop.f32.mrb[21].mxu1 }
 0x143   : > { %2085 = vst [vmem:[%s3355_s29 + $0x28] sm:$0xff] %v781_v6  ;;  %v783_v11 = vpop.f32.mrb[22].mxu0  ;;  %2134 = vst [vmem:[%s3355_s29 + $0x1a8] sm:$0xff] %v668_v7  ;;  %v670_v13 = vpop.f32.mrb[22].mxu1  ;;  %1609 = vmatpush1.bf16.msra.mxu1 %v376_v58 }
 0x144   : > { %2110 = vst [vmem:[%s3355_s29 + $0xe8] sm:$0xff] %v783_v11  ;;  %v785_v16 = vpop.f32.mrb[23].mxu0  ;;  %2158 = vst [vmem:[%s3355_s29 + $0x268] sm:$0xff] %v670_v13  ;;  %v672_v17 = vpop.f32.mrb[23].mxu1  ;;  %1610 = vmatprep.subr.bf16.mxu1 %v402_v61 }
 0x145   : > { %2111 = vst [vmem:[%s3355_s29 + $0xf0] sm:$0xff] %v785_v16  ;;  %2159 = vst [vmem:[%s3355_s29 + $0x270] sm:$0xff] %v672_v17 }
 0x146   : > { %2724 = vmatmul.mubr.msk.bf16.vlgmr.msra.gmra.mrb[128].mxu0 %vm471_vm0, %v3164_v24  ;;  %2716 = vmatmul.mubr.msk.bf16.gmra.mrb[128].mxu1 %vm471_vm0, %v3175_v46  ;;  %v303_v24 = vld [vmem:[#allocation2 + $0x3c0] sm:$0xff] }
 0x147   : > { %1730 = vmatpush1.bf16.msra.mxu0 %v353_v12  ;;  %1525 = vmatprep.mubr.bf16.mxu0 %v3041_v0  ;;  %v403_v47 = vpack.c.bf16 %v328_v30, %v303_v24  ;;  %v230_v24 = vld [vmem:[#allocation2 + $0x178] sm:$0xff] }
 0x148   : > { %1412 = vmatprep.mubr.bf16.mxu1 %v3041_v0  ;;  %1731 = vmatprep.subr.bf16.mxu0 %v379_v18  ;;  %v3529_v18 = vld [vmem:[%s3161_s26 + $0x38] sm:$0xff]  }
 0x149   : > { %v789_v29 = vpop.f32.mrb[24].mxu0  ;;  %v676_v27 = vpop.f32.mrb[24].mxu1  ;;  %1611 = vmatpush1.bf16.msra.mxu1 %v401_v21 }
 0x14a   : > { %2135 = vst [vmem:[%s3355_s29 + $0x1b0] sm:$0xff] %v789_v29  ;;  %v791_v31 = vpop.f32.mrb[25].mxu0  ;;  %2183 = vst [vmem:[%s3355_s29 + $0x330] sm:$0xff] %v676_v27  ;;  %v678_v32 = vpop.f32.mrb[25].mxu1  ;;  %1852 = vmatprep.subr.bf16.mxu1 %v356_v25  ;;  %v3546_v29 = vld [vmem:[%s3161_s26 + $0x40] sm:$0xff]   ;;  %v205_v27 = vld [vmem:[#allocation2 + $0xb0] sm:$0xff] }
 0x14b   : > { %2136 = vst [vmem:[%s3355_s29 + $0x1b8] sm:$0xff] %v791_v31  ;;  %v793_v33 = vpop.f32.mrb[26].mxu0  ;;  %2184 = vst [vmem:[%s3355_s29 + $0x338] sm:$0xff] %v678_v32  ;;  %v680_v34 = vpop.f32.mrb[26].mxu1  ;;  %1732 = vmatpush1.bf16.msra.mxu0 %v378_v26  ;;  %v256_v32 = vld [vmem:[#allocation2 + $0x248] sm:$0xff] }
 0x14c   : > { %2160 = vst [vmem:[%s3355_s29 + $0x278] sm:$0xff] %v793_v33  ;;  %v795_v35 = vpop.f32.mrb[27].mxu0  ;;  %2208 = vst [vmem:[%s3355_s29 + $0x3f8] sm:$0xff] %v680_v34  ;;  %v682_v36 = vpop.f32.mrb[27].mxu1  ;;  %1733 = vmatprep.subr.bf16.mxu0 %v404_v28  ;;  %v281_v33 = vld [vmem:[#allocation2 + $0x310] sm:$0xff] }
 0x14d   : > { %2161 = vst [vmem:[%s3355_s29 + $0x280] sm:$0xff] %v795_v35  ;;  %2209 = vst [vmem:[%s3355_s29 + $0x400] sm:$0xff] %v682_v36 }
 0x14e   : > { %2725 = vmatmul.mubr.msk.bf16.gmra.mrb[132].mxu0 %vm471_vm0, %v3175_v46  ;;  %2717 = vmatmul.mubr.msk.bf16.gmra.mrb[132].mxu1 %vm471_vm0, %v3188_v2 }
 0x14f   : > { %1535 = vmatprep.mubr.bf16.mxu0 %v3041_v0  ;;  %1422 = vmatprep.mubr.bf16.mxu1 %v3041_v0 }
 0x150   : > { %1734 = vmatpush1.bf16.msra.mxu0 %v403_v47 }
 0x151   : > { %v799_v37 = vpop.f32.mrb[28].mxu0  ;;  %v686_v38 = vpop.f32.mrb[28].mxu1  ;;  %2784 = vmatprep.subr.bf16.mxu0 %v3042_v39 }
 0x152   : > { %2185 = vst [vmem:[%s3355_s29 + $0x340] sm:$0xff] %v799_v37  ;;  %v801_v40 = vpop.f32.mrb[29].mxu0  ;;  %2233 = vst [vmem:[%s3355_s29 + $0x4c0] sm:$0xff] %v686_v38  ;;  %v688_v46 = vpop.f32.mrb[29].mxu1  ;;  %v355_v37 = vpack.c.bf16 %v230_v24, %v205_v27  ;;  %v3616_v24 = vld [vmem:[%s3161_s26 + $0x18] sm:$0xff]  }
 0x153   : > { %2186 = vst [vmem:[%s3355_s29 + $0x348] sm:$0xff] %v801_v40  ;;  %v803_v41 = vpop.f32.mrb[30].mxu0  ;;  %2234 = vst [vmem:[%s3355_s29 + $0x4c8] sm:$0xff] %v688_v46  ;;  %v690_v42 = vpop.f32.mrb[30].mxu1  ;;  %v381_v46 = vpack.c.bf16 %v281_v33, %v256_v32 }
 0x154   : > { %2210 = vst [vmem:[%s3355_s29 + $0x408] sm:$0xff] %v803_v41  ;;  %v805_v43 = vpop.f32.mrb[31].mxu0  ;;  %2258 = vst [vmem:[%s3355_s29 + $0x588] sm:$0xff] %v690_v42  ;;  %v692_v44 = vpop.f32.mrb[31].mxu1  ;;  %v255_v41 = vld [vmem:[#allocation2 + $0x240] sm:$0xff]  ;;  %v280_v42 = vld [vmem:[#allocation2 + $0x308] sm:$0xff] }
 0x155   : > { %2211 = vst [vmem:[%s3355_s29 + $0x410] sm:$0xff] %v805_v43  ;;  %2259 = vst [vmem:[%s3355_s29 + $0x590] sm:$0xff] %v692_v44  ;;  %v306_v43 = vld [vmem:[#allocation2 + $0x3d8] sm:$0xff]  ;;  %v331_v44 = vld [vmem:[#allocation2 + $0x4a0] sm:$0xff] }
 0x156   : > { %2726 = vmatmul.mubr.msk.bf16.gmra.mrb[136].mxu0 %vm471_vm0, %v3188_v2  ;;  %2718 = vmatmul.mubr.msk.bf16.gmra.mrb[136].mxu1 %vm471_vm0, %v3200_v4 }
 0x157   : > { %1545 = vmatprep.mubr.bf16.mxu0 %v3041_v0  ;;  %1432 = vmatprep.mubr.bf16.mxu1 %v3041_v0 }
 0x159   : > { %v809_v45 = vpop.f32.mrb[32].mxu0  ;;  %v696_v3 = vpop.f32.mrb[32].mxu1 }
 0x15a   : > { %2235 = vst [vmem:[%s3355_s29 + $0x4d0] sm:$0xff] %v809_v45  ;;  %v811_v48 = vpop.f32.mrb[33].mxu0  ;;  %2283 = vst [vmem:[%s3355_s29 + $0x650] sm:$0xff] %v696_v3  ;;  %v698_v49 = vpop.f32.mrb[33].mxu1  ;;  %v3563_v45 = vld [vmem:[%s3161_s26] sm:$0xff]   ;;  %v380_v3 = vpack.c.bf16 %v280_v42, %v255_v41 }
 0x15b   : > { %2236 = vst [vmem:[%s3355_s29 + $0x4d8] sm:$0xff] %v811_v48  ;;  %v813_v50 = vpop.f32.mrb[34].mxu0  ;;  %2284 = vst [vmem:[%s3355_s29 + $0x658] sm:$0xff] %v698_v49  ;;  %v700_v2 = vpop.f32.mrb[34].mxu1  ;;  %v207_v48 = vld [vmem:[#allocation2 + $0xc0] sm:$0xff]  ;;  %v232_v49 = vld [vmem:[#allocation2 + $0x188] sm:$0xff] }
 0x15c   : > { %2260 = vst [vmem:[%s3355_s29 + $0x598] sm:$0xff] %v813_v50  ;;  %v815_v51 = vpop.f32.mrb[35].mxu0  ;;  %2308 = vst [vmem:[%s3355_s29 + $0x718] sm:$0xff] %v700_v2  ;;  %v702_v52 = vpop.f32.mrb[35].mxu1  ;;  %v406_v50 = vpack.c.bf16 %v331_v44, %v306_v43 }
 0x15d   : > { %2261 = vst [vmem:[%s3355_s29 + $0x5a0] sm:$0xff] %v815_v51  ;;  %2309 = vst [vmem:[%s3355_s29 + $0x720] sm:$0xff] %v702_v52 }
 0x15e   : > { %2727 = vmatmul.mubr.msk.bf16.gmra.mrb[140].mxu0 %vm471_vm0, %v3200_v4  ;;  %2719 = vmatmul.mubr.msk.bf16.gmra.mrb[140].mxu1 %vm471_vm0, %v3212_v10 }
 0x15f   : > { %1555 = vmatprep.mubr.bf16.mxu0 %v3041_v0  ;;  %1442 = vmatprep.mubr.bf16.mxu1 %v3041_v0 }
 0x161   : > { %v819_v53 = vpop.f32.mrb[36].mxu0  ;;  %v706_v54 = vpop.f32.mrb[36].mxu1 }
 0x162   : > { %2285 = vst [vmem:[%s3355_s29 + $0x660] sm:$0xff] %v819_v53  ;;  %v821_v55 = vpop.f32.mrb[37].mxu0  ;;  %2333 = vst [vmem:[%s3355_s29 + $0x7e0] sm:$0xff] %v706_v54  ;;  %v708_v56 = vpop.f32.mrb[37].mxu1  ;;  %v305_v54 = vld [vmem:[#allocation2 + $0x3d0] sm:$0xff] }
 0x163   : > { %2286 = vst [vmem:[%s3355_s29 + $0x668] sm:$0xff] %v821_v55  ;;  %v823_v57 = vpop.f32.mrb[38].mxu0  ;;  %2334 = vst [vmem:[%s3355_s29 + $0x7e8] sm:$0xff] %v708_v56  ;;  %v710_v4 = vpop.f32.mrb[38].mxu1  ;;  %v330_v55 = vld [vmem:[#allocation2 + $0x498] sm:$0xff] }
 0x164   : > { %2310 = vst [vmem:[%s3355_s29 + $0x728] sm:$0xff] %v823_v57  ;;  %v825_v58 = vpop.f32.mrb[39].mxu0  ;;  %2358 = vst [vmem:[%s3355_s29 + $0x8a8] sm:$0xff] %v710_v4  ;;  %v712_v59 = vpop.f32.mrb[39].mxu1  ;;  %v357_v57 = vpack.c.bf16 %v232_v49, %v207_v48 }
 0x165   : > { %2311 = vst [vmem:[%s3355_s29 + $0x730] sm:$0xff] %v825_v58  ;;  %2359 = vst [vmem:[%s3355_s29 + $0x8b0] sm:$0xff] %v712_v59 }
 0x166   : > { %2728 = vmatmul.mubr.msk.bf16.gmra.mrb[144].mxu0 %vm471_vm0, %v3212_v10  ;;  %2720 = vmatmul.mubr.msk.bf16.gmra.mrb[144].mxu1 %vm471_vm0, %v3495_v60 }
 0x167   : > { %1565 = vmatprep.mubr.bf16.mxu0 %v3041_v0  ;;  %1452 = vmatprep.mubr.bf16.mxu1 %v3041_v0 }
 0x169   : > { %v829_v61 = vpop.f32.mrb[40].mxu0  ;;  %v716_v62 = vpop.f32.mrb[40].mxu1 }
 0x16a   : > { %2335 = vst [vmem:[%s3355_s29 + $0x7f0] sm:$0xff] %v829_v61  ;;  %v831_v63 = vpop.f32.mrb[41].mxu0  ;;  %2383 = vst [vmem:[%s3355_s29 + $0x970] sm:$0xff] %v716_v62  ;;  %v718_v1 = vpop.f32.mrb[41].mxu1  ;;  %v257_v61 = vld [vmem:[#allocation2 + $0x250] sm:$0xff]  ;;  %v282_v62 = vld [vmem:[#allocation2 + $0x318] sm:$0xff] }
 0x16b   : > { %2336 = vst [vmem:[%s3355_s29 + $0x7f8] sm:$0xff] %v831_v63  ;;  %v833_v10 = vpop.f32.mrb[42].mxu0  ;;  %2384 = vst [vmem:[%s3355_s29 + $0x978] sm:$0xff] %v718_v1  ;;  %v720_v5 = vpop.f32.mrb[42].mxu1  ;;  %v405_v63 = vpack.c.bf16 %v330_v55, %v305_v54  ;;  %v3580_v1 = vld [vmem:[%s3161_s26 + $0x8] sm:$0xff]  }
 0x16c   : > { %2360 = vst [vmem:[%s3355_s29 + $0x8b8] sm:$0xff] %v833_v10  ;;  %v835_v6 = vpop.f32.mrb[43].mxu0  ;;  %2408 = vst [vmem:[%s3355_s29 + $0xa38] sm:$0xff] %v720_v5  ;;  %v722_v7 = vpop.f32.mrb[43].mxu1  ;;  %v382_v10 = vpack.c.bf16 %v282_v62, %v257_v61 }
 0x16d   : > { %2361 = vst [vmem:[%s3355_s29 + $0x8c0] sm:$0xff] %v835_v6  ;;  %2409 = vst [vmem:[%s3355_s29 + $0xa40] sm:$0xff] %v722_v7  ;;  %v307_v7 = vld [vmem:[#allocation2 + $0x3e0] sm:$0xff] }
 0x16e   : > { %2729 = vmatmul.mubr.msk.bf16.gmra.mrb[148].mxu0 %vm471_vm0, %v3495_v60  ;;  %2721 = vmatmul.mubr.msk.bf16.gmra.mrb[148].mxu1 %vm471_vm0, %v3512_v8 }
 0x16f   : > { %1575 = vmatprep.mubr.bf16.mxu0 %v3041_v0  ;;  %1462 = vmatprep.mubr.bf16.mxu1 %v3041_v0 }
 0x171   : > { %v839_v9 = vpop.f32.mrb[44].mxu0  ;;  %v726_v11 = vpop.f32.mrb[44].mxu1 }
 0x172   : > { %2385 = vst [vmem:[%s3355_s29 + $0x980] sm:$0xff] %v839_v9  ;;  %v841_v12 = vpop.f32.mrb[45].mxu0  ;;  %2433 = vst [vmem:[%s3355_s29 + $0xb00] sm:$0xff] %v726_v11  ;;  %v728_v13 = vpop.f32.mrb[45].mxu1  ;;  %v332_v9 = vld [vmem:[#allocation2 + $0x4a8] sm:$0xff] }
 0x173   : > { %2386 = vst [vmem:[%s3355_s29 + $0x988] sm:$0xff] %v841_v12  ;;  %v843_v14 = vpop.f32.mrb[46].mxu0  ;;  %2434 = vst [vmem:[%s3355_s29 + $0xb08] sm:$0xff] %v728_v13  ;;  %v730_v15 = vpop.f32.mrb[46].mxu1 }
 0x174   : > { %2410 = vst [vmem:[%s3355_s29 + $0xa48] sm:$0xff] %v843_v14  ;;  %v845_v16 = vpop.f32.mrb[47].mxu0  ;;  %2458 = vst [vmem:[%s3355_s29 + $0xbc8] sm:$0xff] %v730_v15  ;;  %v732_v17 = vpop.f32.mrb[47].mxu1 }
 0x175   : > { %2411 = vst [vmem:[%s3355_s29 + $0xa50] sm:$0xff] %v845_v16  ;;  %2459 = vst [vmem:[%s3355_s29 + $0xbd0] sm:$0xff] %v732_v17  ;;  %v407_v17 = vpack.c.bf16 %v332_v9, %v307_v7 }
 0x176   : > { %2730 = vmatmul.mubr.msk.bf16.gmra.mrb[152].mxu0 %vm471_vm0, %v3512_v8  ;;  %2722 = vmatmul.mubr.msk.bf16.gmra.mrb[152].mxu1 %vm471_vm0, %v3529_v18 }
 0x177   : > { %1585 = vmatprep.mubr.bf16.mxu0 %v3041_v0  ;;  %1472 = vmatprep.mubr.bf16.mxu1 %v3041_v0 }
 0x179   : > { %v849_v19 = vpop.f32.mrb[48].mxu0  ;;  %v736_v20 = vpop.f32.mrb[48].mxu1 }
 0x17a   : > { %2435 = vst [vmem:[%s3355_s29 + $0xb10] sm:$0xff] %v849_v19  ;;  %v851_v21 = vpop.f32.mrb[49].mxu0  ;;  %2483 = vst [vmem:[%s3355_s29 + $0xc90] sm:$0xff] %v736_v20  ;;  %v738_v22 = vpop.f32.mrb[49].mxu1  ;;  %v3599_v19 = vld [vmem:[%s3161_s26 + $0x10] sm:$0xff]  }
 0x17b   : > { %2436 = vst [vmem:[%s3355_s29 + $0xb18] sm:$0xff] %v851_v21  ;;  %v853_v23 = vpop.f32.mrb[50].mxu0  ;;  %2484 = vst [vmem:[%s3355_s29 + $0xc98] sm:$0xff] %v738_v22  ;;  %v740_v25 = vpop.f32.mrb[50].mxu1 }
 0x17c   : > { %2460 = vst [vmem:[%s3355_s29 + $0xbd8] sm:$0xff] %v853_v23  ;;  %v855_v26 = vpop.f32.mrb[51].mxu0  ;;  %2508 = vst [vmem:[%s3355_s29 + $0xd58] sm:$0xff] %v740_v25  ;;  %v742_v28 = vpop.f32.mrb[51].mxu1 }
 0x17d   : > { %2461 = vst [vmem:[%s3355_s29 + $0xbe0] sm:$0xff] %v855_v26  ;;  %2509 = vst [vmem:[%s3355_s29 + $0xd60] sm:$0xff] %v742_v28 }
 0x17e   : > { %2731 = vmatmul.mubr.msk.bf16.gmra.mrb[156].mxu0 %vm471_vm0, %v3529_v18  ;;  %2723 = vmatmul.mubr.msk.bf16.gmra.mrb[156].mxu1 %vm471_vm0, %v3546_v29 }
 0x17f   : > { %1595 = vmatprep.mubr.bf16.mxu0 %v3041_v0  ;;  %1638 = vmatprep.mubr.bf16.mxu1 %v3041_v0 }
 0x181   : > { %v859_v30 = vpop.f32.mrb[52].mxu0  ;;  %v902_v31 = vpop.f32.mrb[52].mxu1 }
 0x182   : > { %2485 = vst [vmem:[%s3355_s29 + $0xca0] sm:$0xff] %v859_v30  ;;  %v861_v34 = vpop.f32.mrb[53].mxu0  ;;  %2086 = vst [vmem:[%s3355_s29 + $0x30] sm:$0xff] %v902_v31  ;;  %v904_v35 = vpop.f32.mrb[53].mxu1 }
 0x183   : > { %2486 = vst [vmem:[%s3355_s29 + $0xca8] sm:$0xff] %v861_v34  ;;  %v863_v36 = vpop.f32.mrb[54].mxu0  ;;  %2087 = vst [vmem:[%s3355_s29 + $0x38] sm:$0xff] %v904_v35  ;;  %v906_v47 = vpop.f32.mrb[54].mxu1 }
 0x184   : > { %2510 = vst [vmem:[%s3355_s29 + $0xd68] sm:$0xff] %v863_v36  ;;  %v865_v38 = vpop.f32.mrb[55].mxu0  ;;  %2112 = vst [vmem:[%s3355_s29 + $0xf8] sm:$0xff] %v906_v47  ;;  %v908_v40 = vpop.f32.mrb[55].mxu1 }
 0x185   : > { %2511 = vst [vmem:[%s3355_s29 + $0xd70] sm:$0xff] %v865_v38  ;;  %2113 = vst [vmem:[%s3355_s29 + $0x100] sm:$0xff] %v908_v40 }
 0x186   : > { %2732 = vmatmul.mubr.msk.bf16.gmra.mrb[160].mxu0 %vm471_vm0, %v3546_v29  ;;  %2733 = vmatmul.mubr.msk.bf16.vlgmr.msra.gmra.mrb[160].mxu1 %vm471_vm0, %v3563_v45 }
 0x187   : > { %1761 = vmatprep.mubr.bf16.mxu0 %v3041_v0  ;;  %1853 = vmatpush1.bf16.msra.mxu1 %v355_v37  ;;  %v3633_v37 = vld [vmem:[%s3161_s26 + $0x20] sm:$0xff]  }
 0x188   : > { %1648 = vmatprep.mubr.bf16.mxu1 %v3041_v0  ;;  %1854 = vmatprep.subr.bf16.mxu1 %v381_v46 }
 0x189   : > { %v1025_v2 = vpop.f32.mrb[56].mxu0  ;;  %v912_v51 = vpop.f32.mrb[56].mxu1 }
 0x18a   : > { %2088 = vst [vmem:[%s3355_s29 + $0x40] sm:$0xff] %v1025_v2  ;;  %v1027_v52 = vpop.f32.mrb[57].mxu0  ;;  %2137 = vst [vmem:[%s3355_s29 + $0x1c0] sm:$0xff] %v912_v51  ;;  %v914_v53 = vpop.f32.mrb[57].mxu1 }
 0x18b   : > { %2089 = vst [vmem:[%s3355_s29 + $0x48] sm:$0xff] %v1027_v52  ;;  %v1029_v56 = vpop.f32.mrb[58].mxu0  ;;  %2138 = vst [vmem:[%s3355_s29 + $0x1c8] sm:$0xff] %v914_v53  ;;  %v916_v4 = vpop.f32.mrb[58].mxu1  ;;  %1855 = vmatpush1.bf16.msra.mxu1 %v380_v3 }
 0x18c   : > { %2114 = vst [vmem:[%s3355_s29 + $0x108] sm:$0xff] %v1029_v56  ;;  %v1031_v58 = vpop.f32.mrb[59].mxu0  ;;  %2162 = vst [vmem:[%s3355_s29 + $0x288] sm:$0xff] %v916_v4  ;;  %v918_v59 = vpop.f32.mrb[59].mxu1  ;;  %1856 = vmatprep.subr.bf16.mxu1 %v406_v50 }
 0x18d   : > { %2115 = vst [vmem:[%s3355_s29 + $0x110] sm:$0xff] %v1031_v58  ;;  %2163 = vst [vmem:[%s3355_s29 + $0x290] sm:$0xff] %v918_v59 }
 0x18e   : > { %2742 = vmatmul.mubr.msk.bf16.vlgmr.msra.gmra.mrb[164].mxu0 %vm471_vm0, %v3563_v45  ;;  %2734 = vmatmul.mubr.msk.bf16.gmra.mrb[164].mxu1 %vm471_vm0, %v3580_v1 }
 0x18f   : > { %2785 = vmatpush3.bf16.msra.mxu0 %v357_v57  ;;  %1771 = vmatprep.mubr.bf16.mxu0 %v3041_v0 }
 0x190   : > { %1658 = vmatprep.mubr.bf16.mxu1 %v3041_v0  ;;  %2786 = vmatprep.subr.bf16.mxu0 %v3042_v39 }
 0x191   : > { %v1035_v5 = vpop.f32.mrb[60].mxu0  ;;  %v922_v6 = vpop.f32.mrb[60].mxu1  ;;  %1857 = vmatpush1.bf16.msra.mxu1 %v405_v63 }
 0x192   : > { %2139 = vst [vmem:[%s3355_s29 + $0x1d0] sm:$0xff] %v1035_v5  ;;  %v1037_v11 = vpop.f32.mrb[61].mxu0  ;;  %2187 = vst [vmem:[%s3355_s29 + $0x350] sm:$0xff] %v922_v6  ;;  %v924_v12 = vpop.f32.mrb[61].mxu1 }
 0x193   : > { %2140 = vst [vmem:[%s3355_s29 + $0x1d8] sm:$0xff] %v1037_v11  ;;  %v1039_v13 = vpop.f32.mrb[62].mxu0  ;;  %2188 = vst [vmem:[%s3355_s29 + $0x358] sm:$0xff] %v924_v12  ;;  %v926_v14 = vpop.f32.mrb[62].mxu1  ;;  %2787 = vmatpush3.bf16.msra.mxu0 %v382_v10 }
 0x194   : > { %2164 = vst [vmem:[%s3355_s29 + $0x298] sm:$0xff] %v1039_v13  ;;  %v1041_v15 = vpop.f32.mrb[63].mxu0  ;;  %2212 = vst [vmem:[%s3355_s29 + $0x418] sm:$0xff] %v926_v14  ;;  %v928_v16 = vpop.f32.mrb[63].mxu1  ;;  %2788 = vmatprep.subr.bf16.mxu0 %v3042_v39 }
 0x195   : > { %2165 = vst [vmem:[%s3355_s29 + $0x2a0] sm:$0xff] %v1041_v15  ;;  %2213 = vst [vmem:[%s3355_s29 + $0x420] sm:$0xff] %v928_v16 }
 0x196   : > { %2743 = vmatmul.mubr.msk.bf16.gmra.mrb[168].mxu0 %vm471_vm0, %v3580_v1  ;;  %2735 = vmatmul.mubr.msk.bf16.gmra.mrb[168].mxu1 %vm471_vm0, %v3599_v19 }
 0x197   : > { %1781 = vmatprep.mubr.bf16.mxu0 %v3041_v0  ;;  %1668 = vmatprep.mubr.bf16.mxu1 %v3041_v0 }
 0x198   : > { %2789 = vmatpush3.bf16.msra.mxu0 %v407_v17 }
 0x199   : > { %v1045_v20 = vpop.f32.mrb[64].mxu0  ;;  %v932_v21 = vpop.f32.mrb[64].mxu1 }
 0x19a   : > { %2189 = vst [vmem:[%s3355_s29 + $0x360] sm:$0xff] %v1045_v20  ;;  %v1047_v22 = vpop.f32.mrb[65].mxu0  ;;  %2237 = vst [vmem:[%s3355_s29 + $0x4e0] sm:$0xff] %v932_v21  ;;  %v934_v23 = vpop.f32.mrb[65].mxu1 }
 0x19b   : > { %2190 = vst [vmem:[%s3355_s29 + $0x368] sm:$0xff] %v1047_v22  ;;  %v1049_v25 = vpop.f32.mrb[66].mxu0  ;;  %2238 = vst [vmem:[%s3355_s29 + $0x4e8] sm:$0xff] %v934_v23  ;;  %v936_v26 = vpop.f32.mrb[66].mxu1 }
 0x19c   : > { %2214 = vst [vmem:[%s3355_s29 + $0x428] sm:$0xff] %v1049_v25  ;;  %v1051_v28 = vpop.f32.mrb[67].mxu0  ;;  %2262 = vst [vmem:[%s3355_s29 + $0x5a8] sm:$0xff] %v936_v26  ;;  %v938_v27 = vpop.f32.mrb[67].mxu1 }
 0x19d   : > { %2215 = vst [vmem:[%s3355_s29 + $0x430] sm:$0xff] %v1051_v28  ;;  %2263 = vst [vmem:[%s3355_s29 + $0x5b0] sm:$0xff] %v938_v27 }
 0x19e   : > { %2744 = vmatmul.mubr.msk.bf16.gmra.mrb[172].mxu0 %vm471_vm0, %v3599_v19  ;;  %2736 = vmatmul.mubr.msk.bf16.gmra.mrb[172].mxu1 %vm471_vm0, %v3616_v24 }
 0x19f   : > { %1791 = vmatprep.mubr.bf16.mxu0 %v3041_v0  ;;  %1678 = vmatprep.mubr.bf16.mxu1 %v3041_v0 }
 0x1a1   : > { %v1055_v30 = vpop.f32.mrb[68].mxu0  ;;  %v942_v31 = vpop.f32.mrb[68].mxu1 }
 0x1a2   : > { %2239 = vst [vmem:[%s3355_s29 + $0x4f0] sm:$0xff] %v1055_v30  ;;  %v1057_v32 = vpop.f32.mrb[69].mxu0  ;;  %2287 = vst [vmem:[%s3355_s29 + $0x670] sm:$0xff] %v942_v31  ;;  %v944_v33 = vpop.f32.mrb[69].mxu1 }
 0x1a3   : > { %2240 = vst [vmem:[%s3355_s29 + $0x4f8] sm:$0xff] %v1057_v32  ;;  %v1059_v34 = vpop.f32.mrb[70].mxu0  ;;  %2288 = vst [vmem:[%s3355_s29 + $0x678] sm:$0xff] %v944_v33  ;;  %v946_v35 = vpop.f32.mrb[70].mxu1 }
 0x1a4   : > { %2264 = vst [vmem:[%s3355_s29 + $0x5b8] sm:$0xff] %v1059_v34  ;;  %v1061_v36 = vpop.f32.mrb[71].mxu0  ;;  %2312 = vst [vmem:[%s3355_s29 + $0x738] sm:$0xff] %v946_v35  ;;  %v948_v47 = vpop.f32.mrb[71].mxu1 }
 0x1a5   : > { %2265 = vst [vmem:[%s3355_s29 + $0x5c0] sm:$0xff] %v1061_v36  ;;  %2313 = vst [vmem:[%s3355_s29 + $0x740] sm:$0xff] %v948_v47 }
 0x1a6   : > { %2745 = vmatmul.mubr.msk.bf16.gmra.mrb[176].mxu0 %vm471_vm0, %v3616_v24  ;;  %2737 = vmatmul.mubr.msk.bf16.gmra.mrb[176].mxu1 %vm471_vm0, %v3633_v37 }
 0x1a7   : > { %1801 = vmatprep.mubr.bf16.mxu0 %v3041_v0  ;;  %1688 = vmatprep.mubr.bf16.mxu1 %v3041_v0 }
 0x1a9   : > { %v1065_v38 = vpop.f32.mrb[72].mxu0  ;;  %v952_v40 = vpop.f32.mrb[72].mxu1 }
 0x1aa   : > { %2289 = vst [vmem:[%s3355_s29 + $0x680] sm:$0xff] %v1065_v38  ;;  %v1067_v46 = vpop.f32.mrb[73].mxu0  ;;  %2337 = vst [vmem:[%s3355_s29 + $0x800] sm:$0xff] %v952_v40  ;;  %v954_v41 = vpop.f32.mrb[73].mxu1 }
 0x1ab   : > { %2290 = vst [vmem:[%s3355_s29 + $0x688] sm:$0xff] %v1067_v46  ;;  %v1069_v42 = vpop.f32.mrb[74].mxu0  ;;  %2338 = vst [vmem:[%s3355_s29 + $0x808] sm:$0xff] %v954_v41  ;;  %v956_v43 = vpop.f32.mrb[74].mxu1 }
 0x1ac   : > { %2314 = vst [vmem:[%s3355_s29 + $0x748] sm:$0xff] %v1069_v42  ;;  %v1071_v44 = vpop.f32.mrb[75].mxu0  ;;  %2362 = vst [vmem:[%s3355_s29 + $0x8c8] sm:$0xff] %v956_v43  ;;  %v958_v3 = vpop.f32.mrb[75].mxu1 }
 0x1ad   : > { %2315 = vst [vmem:[%s3355_s29 + $0x750] sm:$0xff] %v1071_v44  ;;  %2363 = vst [vmem:[%s3355_s29 + $0x8d0] sm:$0xff] %v958_v3 }
 0x1ae   : > { %2746 = vmatmul.mubr.msk.bf16.gmra.mrb[180].mxu0 %vm471_vm0, %v3633_v37  ;;  %2738 = vmatmul.mubr.msk.bf16.gmra.mrb[180].mxu1 %vm471_vm0, %v3495_v60 }
 0x1af   : > { %1811 = vmatprep.mubr.bf16.mxu0 %v3041_v0  ;;  %1698 = vmatprep.mubr.bf16.mxu1 %v3041_v0 }
 0x1b1   : > { %v1075_v48 = vpop.f32.mrb[76].mxu0  ;;  %v962_v49 = vpop.f32.mrb[76].mxu1 }
 0x1b2   : > { %2339 = vst [vmem:[%s3355_s29 + $0x810] sm:$0xff] %v1075_v48  ;;  %v1077_v50 = vpop.f32.mrb[77].mxu0  ;;  %2387 = vst [vmem:[%s3355_s29 + $0x990] sm:$0xff] %v962_v49  ;;  %v964_v2 = vpop.f32.mrb[77].mxu1 }
 0x1b3   : > { %2340 = vst [vmem:[%s3355_s29 + $0x818] sm:$0xff] %v1077_v50  ;;  %v1079_v51 = vpop.f32.mrb[78].mxu0  ;;  %2388 = vst [vmem:[%s3355_s29 + $0x998] sm:$0xff] %v964_v2  ;;  %v966_v52 = vpop.f32.mrb[78].mxu1 }
 0x1b4   : > { %2364 = vst [vmem:[%s3355_s29 + $0x8d8] sm:$0xff] %v1079_v51  ;;  %v1081_v53 = vpop.f32.mrb[79].mxu0  ;;  %2412 = vst [vmem:[%s3355_s29 + $0xa58] sm:$0xff] %v966_v52  ;;  %v968_v54 = vpop.f32.mrb[79].mxu1 }
 0x1b5   : > { %2365 = vst [vmem:[%s3355_s29 + $0x8e0] sm:$0xff] %v1081_v53  ;;  %2413 = vst [vmem:[%s3355_s29 + $0xa60] sm:$0xff] %v968_v54 }
 0x1b6   : > { %2747 = vmatmul.mubr.msk.bf16.gmra.mrb[184].mxu0 %vm471_vm0, %v3495_v60  ;;  %2739 = vmatmul.mubr.msk.bf16.gmra.mrb[184].mxu1 %vm471_vm0, %v3512_v8 }
 0x1b7   : > { %1821 = vmatprep.mubr.bf16.mxu0 %v3041_v0  ;;  %1708 = vmatprep.mubr.bf16.mxu1 %v3041_v0 }
 0x1b9   : > { %v1085_v55 = vpop.f32.mrb[80].mxu0  ;;  %v972_v56 = vpop.f32.mrb[80].mxu1 }
 0x1ba   : > { %2389 = vst [vmem:[%s3355_s29 + $0x9a0] sm:$0xff] %v1085_v55  ;;  %v1087_v57 = vpop.f32.mrb[81].mxu0  ;;  %2437 = vst [vmem:[%s3355_s29 + $0xb20] sm:$0xff] %v972_v56  ;;  %v974_v4 = vpop.f32.mrb[81].mxu1 }
 0x1bb   : > { %2390 = vst [vmem:[%s3355_s29 + $0x9a8] sm:$0xff] %v1087_v57  ;;  %v1089_v58 = vpop.f32.mrb[82].mxu0  ;;  %2438 = vst [vmem:[%s3355_s29 + $0xb28] sm:$0xff] %v974_v4  ;;  %v976_v59 = vpop.f32.mrb[82].mxu1 }
 0x1bc   : > { %2414 = vst [vmem:[%s3355_s29 + $0xa68] sm:$0xff] %v1089_v58  ;;  %v1091_v61 = vpop.f32.mrb[83].mxu0  ;;  %2462 = vst [vmem:[%s3355_s29 + $0xbe8] sm:$0xff] %v976_v59  ;;  %v978_v62 = vpop.f32.mrb[83].mxu1 }
 0x1bd   : > { %2415 = vst [vmem:[%s3355_s29 + $0xa70] sm:$0xff] %v1091_v61  ;;  %2463 = vst [vmem:[%s3355_s29 + $0xbf0] sm:$0xff] %v978_v62 }
 0x1be   : > { %2748 = vmatmul.mubr.msk.bf16.gmra.mrb[188].mxu0 %vm471_vm0, %v3512_v8  ;;  %2740 = vmatmul.mubr.msk.bf16.gmra.mrb[188].mxu1 %vm471_vm0, %v3529_v18 }
 0x1bf   : > { %1831 = vmatprep.mubr.bf16.mxu0 %v3041_v0  ;;  %1718 = vmatprep.mubr.bf16.mxu1 %v3041_v0 }
 0x1c1   : > { %v1095_v63 = vpop.f32.mrb[84].mxu0  ;;  %v982_v10 = vpop.f32.mrb[84].mxu1 }
 0x1c2   : > { %2439 = vst [vmem:[%s3355_s29 + $0xb30] sm:$0xff] %v1095_v63  ;;  %v1097_v5 = vpop.f32.mrb[85].mxu0  ;;  %2487 = vst [vmem:[%s3355_s29 + $0xcb0] sm:$0xff] %v982_v10  ;;  %v984_v6 = vpop.f32.mrb[85].mxu1 }
 0x1c3   : > { %2440 = vst [vmem:[%s3355_s29 + $0xb38] sm:$0xff] %v1097_v5  ;;  %v1099_v7 = vpop.f32.mrb[86].mxu0  ;;  %2488 = vst [vmem:[%s3355_s29 + $0xcb8] sm:$0xff] %v984_v6  ;;  %v986_v9 = vpop.f32.mrb[86].mxu1 }
 0x1c4   : > { %2464 = vst [vmem:[%s3355_s29 + $0xbf8] sm:$0xff] %v1099_v7  ;;  %v1101_v11 = vpop.f32.mrb[87].mxu0  ;;  %2512 = vst [vmem:[%s3355_s29 + $0xd78] sm:$0xff] %v986_v9  ;;  %v988_v12 = vpop.f32.mrb[87].mxu1 }
 0x1c5   : > { %2465 = vst [vmem:[%s3355_s29 + $0xc00] sm:$0xff] %v1101_v11  ;;  %2513 = vst [vmem:[%s3355_s29 + $0xd80] sm:$0xff] %v988_v12 }
 0x1c6   : > { %2749 = vmatmul.mubr.msk.bf16.gmra.mrb[192].mxu0 %vm471_vm0, %v3529_v18  ;;  %2741 = vmatmul.mubr.msk.bf16.gmra.mrb[192].mxu1 %vm471_vm0, %v3546_v29 }
 0x1c7   : > { %1841 = vmatprep.mubr.bf16.mxu0 %v3041_v0  ;;  %1884 = vmatprep.mubr.bf16.mxu1 %v3041_v0 }
 0x1c9   : > { %v1105_v13 = vpop.f32.mrb[88].mxu0  ;;  %v1148_v14 = vpop.f32.mrb[88].mxu1 }
 0x1ca   : > { %2489 = vst [vmem:[%s3355_s29 + $0xcc0] sm:$0xff] %v1105_v13  ;;  %v1107_v15 = vpop.f32.mrb[89].mxu0  ;;  %2090 = vst [vmem:[%s3355_s29 + $0x50] sm:$0xff] %v1148_v14  ;;  %v1150_v16 = vpop.f32.mrb[89].mxu1 }
 0x1cb   : > { %2490 = vst [vmem:[%s3355_s29 + $0xcc8] sm:$0xff] %v1107_v15  ;;  %v1109_v17 = vpop.f32.mrb[90].mxu0  ;;  %2091 = vst [vmem:[%s3355_s29 + $0x58] sm:$0xff] %v1150_v16  ;;  %v1152_v20 = vpop.f32.mrb[90].mxu1 }
 0x1cc   : > { %2514 = vst [vmem:[%s3355_s29 + $0xd88] sm:$0xff] %v1109_v17  ;;  %v1111_v21 = vpop.f32.mrb[91].mxu0  ;;  %2116 = vst [vmem:[%s3355_s29 + $0x118] sm:$0xff] %v1152_v20  ;;  %v1154_v22 = vpop.f32.mrb[91].mxu1 }
 0x1cd   : > { %2515 = vst [vmem:[%s3355_s29 + $0xd90] sm:$0xff] %v1111_v21  ;;  %2117 = vst [vmem:[%s3355_s29 + $0x120] sm:$0xff] %v1154_v22 }
 0x1ce   : > { %2750 = vmatmul.mubr.msk.bf16.gmra.mrb[196].mxu0 %vm471_vm0, %v3546_v29  ;;  %2751 = vmatmul.mubr.msk.bf16.vlgmr.msra.gmra.mrb[196].mxu1 %vm471_vm0, %v3563_v45 }
 0x1cf   : > { %2790 = vmatprep.mubr.msk.bf16.mxu0 %vm3043_vm1, %v3042_v39  ;;  %1894 = vmatprep.mubr.bf16.mxu1 %v3041_v0 }
 0x1d1   : > { %v1271_v23 = vpop.f32.mrb[92].mxu0  ;;  %v1158_v25 = vpop.f32.mrb[92].mxu1 }
 0x1d2   : > { %2092 = vst [vmem:[%s3355_s29 + $0x60] sm:$0xff] %v1271_v23  ;;  %v1273_v26 = vpop.f32.mrb[93].mxu0  ;;  %2141 = vst [vmem:[%s3355_s29 + $0x1e0] sm:$0xff] %v1158_v25  ;;  %v1160_v28 = vpop.f32.mrb[93].mxu1 }
 0x1d3   : > { %2093 = vst [vmem:[%s3355_s29 + $0x68] sm:$0xff] %v1273_v26  ;;  %v1275_v27 = vpop.f32.mrb[94].mxu0  ;;  %2142 = vst [vmem:[%s3355_s29 + $0x1e8] sm:$0xff] %v1160_v28  ;;  %v1162_v30 = vpop.f32.mrb[94].mxu1 }
 0x1d4   : > { %2118 = vst [vmem:[%s3355_s29 + $0x128] sm:$0xff] %v1275_v27  ;;  %v1277_v31 = vpop.f32.mrb[95].mxu0  ;;  %2166 = vst [vmem:[%s3355_s29 + $0x2a8] sm:$0xff] %v1162_v30  ;;  %v1164_v32 = vpop.f32.mrb[95].mxu1 }
 0x1d5   : > { %2119 = vst [vmem:[%s3355_s29 + $0x130] sm:$0xff] %v1277_v31  ;;  %2167 = vst [vmem:[%s3355_s29 + $0x2b0] sm:$0xff] %v1164_v32 }
 0x1d6   : > { %2791 = vmatmul.mubr.msk.bf16.vlgmr.msra.gmra.mrb[200].mxu0 %vm471_vm0, %v3563_v45  ;;  %2752 = vmatmul.mubr.msk.bf16.gmra.mrb[200].mxu1 %vm471_vm0, %v3580_v1 }
 0x1d7   : > { %2794 = vmatprep.mubr.msk.bf16.mxu0 %vm3043_vm1, %v3042_v39  ;;  %1904 = vmatprep.mubr.bf16.mxu1 %v3041_v0 }
 0x1d9   : > { %v1281_v33 = vpop.f32.mrb[96].mxu0  ;;  %v1168_v34 = vpop.f32.mrb[96].mxu1 }
 0x1da   : > { %2143 = vst [vmem:[%s3355_s29 + $0x1f0] sm:$0xff] %v1281_v33  ;;  %v1283_v35 = vpop.f32.mrb[97].mxu0  ;;  %2191 = vst [vmem:[%s3355_s29 + $0x370] sm:$0xff] %v1168_v34  ;;  %v1170_v36 = vpop.f32.mrb[97].mxu1 }
 0x1db   : > { %2144 = vst [vmem:[%s3355_s29 + $0x1f8] sm:$0xff] %v1283_v35  ;;  %v1285_v45 = vpop.f32.mrb[98].mxu0  ;;  %2192 = vst [vmem:[%s3355_s29 + $0x378] sm:$0xff] %v1170_v36  ;;  %v1172_v47 = vpop.f32.mrb[98].mxu1 }
 0x1dc   : > { %2168 = vst [vmem:[%s3355_s29 + $0x2b8] sm:$0xff] %v1285_v45  ;;  %v1287_v38 = vpop.f32.mrb[99].mxu0  ;;  %2216 = vst [vmem:[%s3355_s29 + $0x438] sm:$0xff] %v1172_v47  ;;  %v1174_v40 = vpop.f32.mrb[99].mxu1 }
 0x1dd   : > { %2169 = vst [vmem:[%s3355_s29 + $0x2c0] sm:$0xff] %v1287_v38  ;;  %2217 = vst [vmem:[%s3355_s29 + $0x440] sm:$0xff] %v1174_v40 }
 0x1de   : > { %2795 = vmatmul.mubr.msk.bf16.gmra.mrb[204].mxu0 %vm471_vm0, %v3580_v1  ;;  %2753 = vmatmul.mubr.msk.bf16.gmra.mrb[204].mxu1 %vm471_vm0, %v3599_v19 }
 0x1df   : > { %2798 = vmatprep.mubr.msk.bf16.mxu0 %vm3043_vm1, %v3042_v39  ;;  %1914 = vmatprep.mubr.bf16.mxu1 %v3041_v0 }
 0x1e1   : > { %v1291_v46 = vpop.f32.mrb[100].mxu0  ;;  %v1178_v41 = vpop.f32.mrb[100].mxu1 }
 0x1e2   : > { %2193 = vst [vmem:[%s3355_s29 + $0x380] sm:$0xff] %v1291_v46  ;;  %v1293_v42 = vpop.f32.mrb[101].mxu0  ;;  %2241 = vst [vmem:[%s3355_s29 + $0x500] sm:$0xff] %v1178_v41  ;;  %v1180_v43 = vpop.f32.mrb[101].mxu1 }
 0x1e3   : > { %2194 = vst [vmem:[%s3355_s29 + $0x388] sm:$0xff] %v1293_v42  ;;  %v1295_v1 = vpop.f32.mrb[102].mxu0  ;;  %2242 = vst [vmem:[%s3355_s29 + $0x508] sm:$0xff] %v1180_v43  ;;  %v1182_v44 = vpop.f32.mrb[102].mxu1 }
 0x1e4   : > { %2218 = vst [vmem:[%s3355_s29 + $0x448] sm:$0xff] %v1295_v1  ;;  %v1297_v3 = vpop.f32.mrb[103].mxu0  ;;  %2266 = vst [vmem:[%s3355_s29 + $0x5c8] sm:$0xff] %v1182_v44  ;;  %v1184_v48 = vpop.f32.mrb[103].mxu1 }
 0x1e5   : > { %2219 = vst [vmem:[%s3355_s29 + $0x450] sm:$0xff] %v1297_v3  ;;  %2267 = vst [vmem:[%s3355_s29 + $0x5d0] sm:$0xff] %v1184_v48 }
 0x1e6   : > { %2799 = vmatmul.mubr.msk.bf16.gmra.mrb[208].mxu0 %vm471_vm0, %v3599_v19  ;;  %2754 = vmatmul.mubr.msk.bf16.gmra.mrb[208].mxu1 %vm471_vm0, %v3616_v24 }
 0x1e7   : > { %2802 = vmatprep.mubr.msk.bf16.mxu0 %vm3043_vm1, %v3042_v39  ;;  %1924 = vmatprep.mubr.bf16.mxu1 %v3041_v0 }
 0x1e9   : > { %v1301_v49 = vpop.f32.mrb[104].mxu0  ;;  %v1188_v50 = vpop.f32.mrb[104].mxu1 }
 0x1ea   : > { %2243 = vst [vmem:[%s3355_s29 + $0x510] sm:$0xff] %v1301_v49  ;;  %v1303_v2 = vpop.f32.mrb[105].mxu0  ;;  %2291 = vst [vmem:[%s3355_s29 + $0x690] sm:$0xff] %v1188_v50  ;;  %v1190_v51 = vpop.f32.mrb[105].mxu1 }
 0x1eb   : > { %2244 = vst [vmem:[%s3355_s29 + $0x518] sm:$0xff] %v1303_v2  ;;  %v1305_v19 = vpop.f32.mrb[106].mxu0  ;;  %2292 = vst [vmem:[%s3355_s29 + $0x698] sm:$0xff] %v1190_v51  ;;  %v1192_v52 = vpop.f32.mrb[106].mxu1 }
 0x1ec   : > { %2268 = vst [vmem:[%s3355_s29 + $0x5d8] sm:$0xff] %v1305_v19  ;;  %v1307_v53 = vpop.f32.mrb[107].mxu0  ;;  %2316 = vst [vmem:[%s3355_s29 + $0x758] sm:$0xff] %v1192_v52  ;;  %v1194_v54 = vpop.f32.mrb[107].mxu1 }
 0x1ed   : > { %2269 = vst [vmem:[%s3355_s29 + $0x5e0] sm:$0xff] %v1307_v53  ;;  %2317 = vst [vmem:[%s3355_s29 + $0x760] sm:$0xff] %v1194_v54 }
 0x1ee   : > { %2803 = vmatmul.mubr.msk.bf16.gmra.mrb[212].mxu0 %vm471_vm0, %v3616_v24  ;;  %2755 = vmatmul.mubr.msk.bf16.gmra.mrb[212].mxu1 %vm471_vm0, %v3633_v37 }
 0x1ef   : > { %2806 = vmatprep.mubr.msk.bf16.mxu0 %vm3043_vm1, %v3042_v39  ;;  %1934 = vmatprep.mubr.bf16.mxu1 %v3041_v0 }
 0x1f1   : > { %v1311_v55 = vpop.f32.mrb[108].mxu0  ;;  %v1198_v56 = vpop.f32.mrb[108].mxu1 }
 0x1f2   : > { %2293 = vst [vmem:[%s3355_s29 + $0x6a0] sm:$0xff] %v1311_v55  ;;  %v1313_v57 = vpop.f32.mrb[109].mxu0  ;;  %2341 = vst [vmem:[%s3355_s29 + $0x820] sm:$0xff] %v1198_v56  ;;  %v1200_v4 = vpop.f32.mrb[109].mxu1 }
 0x1f3   : > { %2294 = vst [vmem:[%s3355_s29 + $0x6a8] sm:$0xff] %v1313_v57  ;;  %v1315_v24 = vpop.f32.mrb[110].mxu0  ;;  %2342 = vst [vmem:[%s3355_s29 + $0x828] sm:$0xff] %v1200_v4  ;;  %v1202_v58 = vpop.f32.mrb[110].mxu1 }
 0x1f4   : > { %2318 = vst [vmem:[%s3355_s29 + $0x768] sm:$0xff] %v1315_v24  ;;  %v1317_v59 = vpop.f32.mrb[111].mxu0  ;;  %2366 = vst [vmem:[%s3355_s29 + $0x8e8] sm:$0xff] %v1202_v58  ;;  %v1204_v61 = vpop.f32.mrb[111].mxu1 }
 0x1f5   : > { %2319 = vst [vmem:[%s3355_s29 + $0x770] sm:$0xff] %v1317_v59  ;;  %2367 = vst [vmem:[%s3355_s29 + $0x8f0] sm:$0xff] %v1204_v61 }
 0x1f6   : > { %2807 = vmatmul.mubr.msk.bf16.gmra.mrb[216].mxu0 %vm471_vm0, %v3633_v37  ;;  %2756 = vmatmul.mubr.msk.bf16.gmra.mrb[216].mxu1 %vm471_vm0, %v3495_v60 }
 0x1f7   : > { %2810 = vmatprep.mubr.msk.bf16.mxu0 %vm3043_vm1, %v3042_v39  ;;  %1944 = vmatprep.mubr.bf16.mxu1 %v3041_v0 }
 0x1f9   : > { %v1321_v62 = vpop.f32.mrb[112].mxu0  ;;  %v1208_v63 = vpop.f32.mrb[112].mxu1 }
 0x1fa   : > { %2343 = vst [vmem:[%s3355_s29 + $0x830] sm:$0xff] %v1321_v62  ;;  %v1323_v10 = vpop.f32.mrb[113].mxu0  ;;  %2391 = vst [vmem:[%s3355_s29 + $0x9b0] sm:$0xff] %v1208_v63  ;;  %v1210_v5 = vpop.f32.mrb[113].mxu1 }
 0x1fb   : > { %2344 = vst [vmem:[%s3355_s29 + $0x838] sm:$0xff] %v1323_v10  ;;  %v1325_v37 = vpop.f32.mrb[114].mxu0  ;;  %2392 = vst [vmem:[%s3355_s29 + $0x9b8] sm:$0xff] %v1210_v5  ;;  %v1212_v6 = vpop.f32.mrb[114].mxu1 }
 0x1fc   : > { %2368 = vst [vmem:[%s3355_s29 + $0x8f8] sm:$0xff] %v1325_v37  ;;  %v1327_v7 = vpop.f32.mrb[115].mxu0  ;;  %2416 = vst [vmem:[%s3355_s29 + $0xa78] sm:$0xff] %v1212_v6  ;;  %v1214_v9 = vpop.f32.mrb[115].mxu1 }
 0x1fd   : > { %2369 = vst [vmem:[%s3355_s29 + $0x900] sm:$0xff] %v1327_v7  ;;  %2417 = vst [vmem:[%s3355_s29 + $0xa80] sm:$0xff] %v1214_v9 }
 0x1fe   : > { %2811 = vmatmul.mubr.msk.bf16.gmra.mrb[220].mxu0 %vm471_vm0, %v3495_v60  ;;  %2757 = vmatmul.mubr.msk.bf16.gmra.mrb[220].mxu1 %vm471_vm0, %v3512_v8 }
 0x1ff   : > { %2814 = vmatprep.mubr.msk.bf16.mxu0 %vm3043_vm1, %v3042_v39  ;;  %1954 = vmatprep.mubr.bf16.mxu1 %v3041_v0 }
 0x201   : > { %v1331_v11 = vpop.f32.mrb[116].mxu0  ;;  %v1218_v12 = vpop.f32.mrb[116].mxu1 }
 0x202   : > { %2393 = vst [vmem:[%s3355_s29 + $0x9c0] sm:$0xff] %v1331_v11  ;;  %v1333_v13 = vpop.f32.mrb[117].mxu0  ;;  %2441 = vst [vmem:[%s3355_s29 + $0xb40] sm:$0xff] %v1218_v12  ;;  %v1220_v14 = vpop.f32.mrb[117].mxu1 }
 0x203   : > { %2394 = vst [vmem:[%s3355_s29 + $0x9c8] sm:$0xff] %v1333_v13  ;;  %v1335_v60 = vpop.f32.mrb[118].mxu0  ;;  %2442 = vst [vmem:[%s3355_s29 + $0xb48] sm:$0xff] %v1220_v14  ;;  %v1222_v15 = vpop.f32.mrb[118].mxu1 }
 0x204   : > { %2418 = vst [vmem:[%s3355_s29 + $0xa88] sm:$0xff] %v1335_v60  ;;  %v1337_v16 = vpop.f32.mrb[119].mxu0  ;;  %2466 = vst [vmem:[%s3355_s29 + $0xc08] sm:$0xff] %v1222_v15  ;;  %v1224_v17 = vpop.f32.mrb[119].mxu1 }
 0x205   : > { %2419 = vst [vmem:[%s3355_s29 + $0xa90] sm:$0xff] %v1337_v16  ;;  %2467 = vst [vmem:[%s3355_s29 + $0xc10] sm:$0xff] %v1224_v17 }
 0x206   : > { %2815 = vmatmul.mubr.msk.bf16.gmra.mrb[224].mxu0 %vm471_vm0, %v3512_v8  ;;  %2758 = vmatmul.mubr.msk.bf16.gmra.mrb[224].mxu1 %vm471_vm0, %v3529_v18 }
 0x207   : > { %2818 = vmatprep.mubr.msk.bf16.mxu0 %vm3043_vm1, %v3042_v39  ;;  %1964 = vmatprep.mubr.bf16.mxu1 %v3041_v0 }
 0x209   : > { %v1341_v20 = vpop.f32.mrb[120].mxu0  ;;  %v1228_v21 = vpop.f32.mrb[120].mxu1 }
 0x20a   : > { %2443 = vst [vmem:[%s3355_s29 + $0xb50] sm:$0xff] %v1341_v20  ;;  %v1343_v22 = vpop.f32.mrb[121].mxu0  ;;  %2491 = vst [vmem:[%s3355_s29 + $0xcd0] sm:$0xff] %v1228_v21  ;;  %v1230_v23 = vpop.f32.mrb[121].mxu1 }
 0x20b   : > { %2444 = vst [vmem:[%s3355_s29 + $0xb58] sm:$0xff] %v1343_v22  ;;  %v1345_v8 = vpop.f32.mrb[122].mxu0  ;;  %2492 = vst [vmem:[%s3355_s29 + $0xcd8] sm:$0xff] %v1230_v23  ;;  %v1232_v25 = vpop.f32.mrb[122].mxu1 }
 0x20c   : > { %2468 = vst [vmem:[%s3355_s29 + $0xc18] sm:$0xff] %v1345_v8  ;;  %v1347_v26 = vpop.f32.mrb[123].mxu0  ;;  %2516 = vst [vmem:[%s3355_s29 + $0xd98] sm:$0xff] %v1232_v25  ;;  %v1234_v28 = vpop.f32.mrb[123].mxu1 }
 0x20d   : > { %2469 = vst [vmem:[%s3355_s29 + $0xc20] sm:$0xff] %v1347_v26  ;;  %2517 = vst [vmem:[%s3355_s29 + $0xda0] sm:$0xff] %v1234_v28 }
 0x20e   : > { %2819 = vmatmul.mubr.msk.bf16.gmra.mrb[228].mxu0 %vm471_vm0, %v3529_v18  ;;  %2759 = vmatmul.mubr.msk.bf16.gmra.mrb[228].mxu1 %vm471_vm0, %v3546_v29 }
 0x20f   : > { %2822 = vmatprep.mubr.msk.bf16.mxu0 %vm3043_vm1, %v3042_v39 }
 0x211   : > { %v1351_v0 = vpop.f32.mrb[124].mxu0  ;;  %v1394_v27 = vpop.f32.mrb[124].mxu1 }
 0x212   : > { %2493 = vst [vmem:[%s3355_s29 + $0xce0] sm:$0xff] %v1351_v0  ;;  %v1353_v30 = vpop.f32.mrb[125].mxu0  ;;  %2094 = vst [vmem:[%s3355_s29 + $0x70] sm:$0xff] %v1394_v27  ;;  %v1396_v31 = vpop.f32.mrb[125].mxu1 }
 0x213   : > { %2494 = vst [vmem:[%s3355_s29 + $0xce8] sm:$0xff] %v1353_v30  ;;  %v1355_v32 = vpop.f32.mrb[126].mxu0  ;;  %2095 = vst [vmem:[%s3355_s29 + $0x78] sm:$0xff] %v1396_v31  ;;  %v1398_v18 = vpop.f32.mrb[126].mxu1 }
 0x214   : > { %2518 = vst [vmem:[%s3355_s29 + $0xda8] sm:$0xff] %v1355_v32  ;;  %v1357_v33 = vpop.f32.mrb[127].mxu0  ;;  %2120 = vst [vmem:[%s3355_s29 + $0x138] sm:$0xff] %v1398_v18  ;;  %v1400_v39 = vpop.f32.mrb[127].mxu1 }
 0x215   : > { %2519 = vst [vmem:[%s3355_s29 + $0xdb0] sm:$0xff] %v1357_v33  ;;  %2121 = vst [vmem:[%s3355_s29 + $0x140] sm:$0xff] %v1400_v39 }
 0x216   : > { %2823 = vmatmul.mubr.msk.bf16.gmra.mrb[232].mxu0 %vm471_vm0, %v3546_v29 }
 0x219   : > { %v1517_v34 = vpop.f32.mrb[128].mxu0  ;;  %v1404_v35 = vpop.f32.mrb[128].mxu1 }
 0x21a   : > { %2096 = vst [vmem:[%s3355_s29 + $0x80] sm:$0xff] %v1517_v34  ;;  %v1519_v36 = vpop.f32.mrb[129].mxu0  ;;  %2145 = vst [vmem:[%s3355_s29 + $0x200] sm:$0xff] %v1404_v35  ;;  %v1406_v45 = vpop.f32.mrb[129].mxu1 }
 0x21b   : > { %2097 = vst [vmem:[%s3355_s29 + $0x88] sm:$0xff] %v1519_v36  ;;  %v1521_v47 = vpop.f32.mrb[130].mxu0  ;;  %2146 = vst [vmem:[%s3355_s29 + $0x208] sm:$0xff] %v1406_v45  ;;  %v1408_v38 = vpop.f32.mrb[130].mxu1 }
 0x21c   : > { %2122 = vst [vmem:[%s3355_s29 + $0x148] sm:$0xff] %v1521_v47  ;;  %v1523_v40 = vpop.f32.mrb[131].mxu0  ;;  %2170 = vst [vmem:[%s3355_s29 + $0x2c8] sm:$0xff] %v1408_v38  ;;  %v1410_v29 = vpop.f32.mrb[131].mxu1 }
 0x21d   : > { %2123 = vst [vmem:[%s3355_s29 + $0x150] sm:$0xff] %v1523_v40  ;;  %2171 = vst [vmem:[%s3355_s29 + $0x2d0] sm:$0xff] %v1410_v29 }
 0x221   : > { %v1527_v46 = vpop.f32.mrb[132].mxu0  ;;  %v1414_v41 = vpop.f32.mrb[132].mxu1 }
 0x222   : > { %2147 = vst [vmem:[%s3355_s29 + $0x210] sm:$0xff] %v1527_v46  ;;  %v1529_v42 = vpop.f32.mrb[133].mxu0  ;;  %2195 = vst [vmem:[%s3355_s29 + $0x390] sm:$0xff] %v1414_v41  ;;  %v1416_v43 = vpop.f32.mrb[133].mxu1 }
 0x223   : > { %2148 = vst [vmem:[%s3355_s29 + $0x218] sm:$0xff] %v1529_v42  ;;  %v1531_v1 = vpop.f32.mrb[134].mxu0  ;;  %2196 = vst [vmem:[%s3355_s29 + $0x398] sm:$0xff] %v1416_v43  ;;  %v1418_v44 = vpop.f32.mrb[134].mxu1 }
 0x224   : > { %2172 = vst [vmem:[%s3355_s29 + $0x2d8] sm:$0xff] %v1531_v1  ;;  %v1533_v3 = vpop.f32.mrb[135].mxu0  ;;  %2220 = vst [vmem:[%s3355_s29 + $0x458] sm:$0xff] %v1418_v44  ;;  %v1420_v48 = vpop.f32.mrb[135].mxu1 }
 0x225   : > { %2173 = vst [vmem:[%s3355_s29 + $0x2e0] sm:$0xff] %v1533_v3  ;;  %2221 = vst [vmem:[%s3355_s29 + $0x460] sm:$0xff] %v1420_v48 }
 0x229   : > { %v1537_v49 = vpop.f32.mrb[136].mxu0  ;;  %v1424_v50 = vpop.f32.mrb[136].mxu1 }
 0x22a   : > { %2197 = vst [vmem:[%s3355_s29 + $0x3a0] sm:$0xff] %v1537_v49  ;;  %v1539_v2 = vpop.f32.mrb[137].mxu0  ;;  %2245 = vst [vmem:[%s3355_s29 + $0x520] sm:$0xff] %v1424_v50  ;;  %v1426_v51 = vpop.f32.mrb[137].mxu1 }
 0x22b   : > { %2198 = vst [vmem:[%s3355_s29 + $0x3a8] sm:$0xff] %v1539_v2  ;;  %v1541_v19 = vpop.f32.mrb[138].mxu0  ;;  %2246 = vst [vmem:[%s3355_s29 + $0x528] sm:$0xff] %v1426_v51  ;;  %v1428_v52 = vpop.f32.mrb[138].mxu1 }
 0x22c   : > { %2222 = vst [vmem:[%s3355_s29 + $0x468] sm:$0xff] %v1541_v19  ;;  %v1543_v53 = vpop.f32.mrb[139].mxu0  ;;  %2270 = vst [vmem:[%s3355_s29 + $0x5e8] sm:$0xff] %v1428_v52  ;;  %v1430_v54 = vpop.f32.mrb[139].mxu1 }
 0x22d   : > { %2223 = vst [vmem:[%s3355_s29 + $0x470] sm:$0xff] %v1543_v53  ;;  %2271 = vst [vmem:[%s3355_s29 + $0x5f0] sm:$0xff] %v1430_v54 }
 0x231   : > { %v1547_v55 = vpop.f32.mrb[140].mxu0  ;;  %v1434_v56 = vpop.f32.mrb[140].mxu1 }
 0x232   : > { %2247 = vst [vmem:[%s3355_s29 + $0x530] sm:$0xff] %v1547_v55  ;;  %v1549_v57 = vpop.f32.mrb[141].mxu0  ;;  %2295 = vst [vmem:[%s3355_s29 + $0x6b0] sm:$0xff] %v1434_v56  ;;  %v1436_v4 = vpop.f32.mrb[141].mxu1 }
 0x233   : > { %2248 = vst [vmem:[%s3355_s29 + $0x538] sm:$0xff] %v1549_v57  ;;  %v1551_v24 = vpop.f32.mrb[142].mxu0  ;;  %2296 = vst [vmem:[%s3355_s29 + $0x6b8] sm:$0xff] %v1436_v4  ;;  %v1438_v58 = vpop.f32.mrb[142].mxu1 }
 0x234   : > { %2272 = vst [vmem:[%s3355_s29 + $0x5f8] sm:$0xff] %v1551_v24  ;;  %v1553_v59 = vpop.f32.mrb[143].mxu0  ;;  %2320 = vst [vmem:[%s3355_s29 + $0x778] sm:$0xff] %v1438_v58  ;;  %v1440_v61 = vpop.f32.mrb[143].mxu1 }
 0x235   : > { %2273 = vst [vmem:[%s3355_s29 + $0x600] sm:$0xff] %v1553_v59  ;;  %2321 = vst [vmem:[%s3355_s29 + $0x780] sm:$0xff] %v1440_v61 }
 0x239   : > { %v1557_v62 = vpop.f32.mrb[144].mxu0  ;;  %v1444_v63 = vpop.f32.mrb[144].mxu1 }
 0x23a   : > { %2297 = vst [vmem:[%s3355_s29 + $0x6c0] sm:$0xff] %v1557_v62  ;;  %v1559_v10 = vpop.f32.mrb[145].mxu0  ;;  %2345 = vst [vmem:[%s3355_s29 + $0x840] sm:$0xff] %v1444_v63  ;;  %v1446_v5 = vpop.f32.mrb[145].mxu1 }
 0x23b   : > { %2298 = vst [vmem:[%s3355_s29 + $0x6c8] sm:$0xff] %v1559_v10  ;;  %v1561_v37 = vpop.f32.mrb[146].mxu0  ;;  %2346 = vst [vmem:[%s3355_s29 + $0x848] sm:$0xff] %v1446_v5  ;;  %v1448_v6 = vpop.f32.mrb[146].mxu1 }
 0x23c   : > { %2322 = vst [vmem:[%s3355_s29 + $0x788] sm:$0xff] %v1561_v37  ;;  %v1563_v7 = vpop.f32.mrb[147].mxu0  ;;  %2370 = vst [vmem:[%s3355_s29 + $0x908] sm:$0xff] %v1448_v6  ;;  %v1450_v9 = vpop.f32.mrb[147].mxu1 }
 0x23d   : > { %2323 = vst [vmem:[%s3355_s29 + $0x790] sm:$0xff] %v1563_v7  ;;  %2371 = vst [vmem:[%s3355_s29 + $0x910] sm:$0xff] %v1450_v9 }
 0x241   : > { %v1567_v11 = vpop.f32.mrb[148].mxu0  ;;  %v1454_v12 = vpop.f32.mrb[148].mxu1 }
 0x242   : > { %2347 = vst [vmem:[%s3355_s29 + $0x850] sm:$0xff] %v1567_v11  ;;  %v1569_v13 = vpop.f32.mrb[149].mxu0  ;;  %2395 = vst [vmem:[%s3355_s29 + $0x9d0] sm:$0xff] %v1454_v12  ;;  %v1456_v14 = vpop.f32.mrb[149].mxu1 }
 0x243   : > { %2348 = vst [vmem:[%s3355_s29 + $0x858] sm:$0xff] %v1569_v13  ;;  %v1571_v60 = vpop.f32.mrb[150].mxu0  ;;  %2396 = vst [vmem:[%s3355_s29 + $0x9d8] sm:$0xff] %v1456_v14  ;;  %v1458_v15 = vpop.f32.mrb[150].mxu1 }
 0x244   : > { %2372 = vst [vmem:[%s3355_s29 + $0x918] sm:$0xff] %v1571_v60  ;;  %v1573_v16 = vpop.f32.mrb[151].mxu0  ;;  %2420 = vst [vmem:[%s3355_s29 + $0xa98] sm:$0xff] %v1458_v15  ;;  %v1460_v17 = vpop.f32.mrb[151].mxu1 }
 0x245   : > { %2373 = vst [vmem:[%s3355_s29 + $0x920] sm:$0xff] %v1573_v16  ;;  %2421 = vst [vmem:[%s3355_s29 + $0xaa0] sm:$0xff] %v1460_v17 }
 0x249   : > { %v1577_v20 = vpop.f32.mrb[152].mxu0  ;;  %v1464_v21 = vpop.f32.mrb[152].mxu1 }
 0x24a   : > { %2397 = vst [vmem:[%s3355_s29 + $0x9e0] sm:$0xff] %v1577_v20  ;;  %v1579_v22 = vpop.f32.mrb[153].mxu0  ;;  %2445 = vst [vmem:[%s3355_s29 + $0xb60] sm:$0xff] %v1464_v21  ;;  %v1466_v23 = vpop.f32.mrb[153].mxu1 }
 0x24b   : > { %2398 = vst [vmem:[%s3355_s29 + $0x9e8] sm:$0xff] %v1579_v22  ;;  %v1581_v8 = vpop.f32.mrb[154].mxu0  ;;  %2446 = vst [vmem:[%s3355_s29 + $0xb68] sm:$0xff] %v1466_v23  ;;  %v1468_v25 = vpop.f32.mrb[154].mxu1 }
 0x24c   : > { %2422 = vst [vmem:[%s3355_s29 + $0xaa8] sm:$0xff] %v1581_v8  ;;  %v1583_v26 = vpop.f32.mrb[155].mxu0  ;;  %2470 = vst [vmem:[%s3355_s29 + $0xc28] sm:$0xff] %v1468_v25  ;;  %v1470_v28 = vpop.f32.mrb[155].mxu1 }
 0x24d   : > { %2423 = vst [vmem:[%s3355_s29 + $0xab0] sm:$0xff] %v1583_v26  ;;  %2471 = vst [vmem:[%s3355_s29 + $0xc30] sm:$0xff] %v1470_v28 }
 0x251   : > { %v1587_v0 = vpop.f32.mrb[156].mxu0  ;;  %v1474_v27 = vpop.f32.mrb[156].mxu1 }
 0x252   : > { %2447 = vst [vmem:[%s3355_s29 + $0xb70] sm:$0xff] %v1587_v0  ;;  %v1589_v30 = vpop.f32.mrb[157].mxu0  ;;  %2495 = vst [vmem:[%s3355_s29 + $0xcf0] sm:$0xff] %v1474_v27  ;;  %v1476_v31 = vpop.f32.mrb[157].mxu1 }
 0x253   : > { %2448 = vst [vmem:[%s3355_s29 + $0xb78] sm:$0xff] %v1589_v30  ;;  %v1591_v32 = vpop.f32.mrb[158].mxu0  ;;  %2496 = vst [vmem:[%s3355_s29 + $0xcf8] sm:$0xff] %v1476_v31  ;;  %v1478_v18 = vpop.f32.mrb[158].mxu1 }
 0x254   : > { %2472 = vst [vmem:[%s3355_s29 + $0xc38] sm:$0xff] %v1591_v32  ;;  %v1593_v33 = vpop.f32.mrb[159].mxu0  ;;  %2520 = vst [vmem:[%s3355_s29 + $0xdb8] sm:$0xff] %v1478_v18  ;;  %v1480_v39 = vpop.f32.mrb[159].mxu1 }
 0x255   : > { %2473 = vst [vmem:[%s3355_s29 + $0xc40] sm:$0xff] %v1593_v33  ;;  %2521 = vst [vmem:[%s3355_s29 + $0xdc0] sm:$0xff] %v1480_v39 }
 0x259   : > { %v1597_v34 = vpop.f32.mrb[160].mxu0  ;;  %v1640_v35 = vpop.f32.mrb[160].mxu1 }
 0x25a   : > { %2497 = vst [vmem:[%s3355_s29 + $0xd00] sm:$0xff] %v1597_v34  ;;  %v1599_v36 = vpop.f32.mrb[161].mxu0  ;;  %2098 = vst [vmem:[%s3355_s29 + $0x90] sm:$0xff] %v1640_v35  ;;  %v1642_v45 = vpop.f32.mrb[161].mxu1 }
 0x25b   : > { %2498 = vst [vmem:[%s3355_s29 + $0xd08] sm:$0xff] %v1599_v36  ;;  %v1601_v47 = vpop.f32.mrb[162].mxu0  ;;  %2099 = vst [vmem:[%s3355_s29 + $0x98] sm:$0xff] %v1642_v45  ;;  %v1644_v38 = vpop.f32.mrb[162].mxu1 }
 0x25c   : > { %2522 = vst [vmem:[%s3355_s29 + $0xdc8] sm:$0xff] %v1601_v47  ;;  %v1603_v40 = vpop.f32.mrb[163].mxu0  ;;  %2124 = vst [vmem:[%s3355_s29 + $0x158] sm:$0xff] %v1644_v38  ;;  %v1646_v29 = vpop.f32.mrb[163].mxu1 }
 0x25d   : > { %2523 = vst [vmem:[%s3355_s29 + $0xdd0] sm:$0xff] %v1603_v40  ;;  %2125 = vst [vmem:[%s3355_s29 + $0x160] sm:$0xff] %v1646_v29 }
 0x261   : > { %v1763_v46 = vpop.f32.mrb[164].mxu0  ;;  %v1650_v41 = vpop.f32.mrb[164].mxu1 }
 0x262   : > { %2100 = vst [vmem:[%s3355_s29 + $0xa0] sm:$0xff] %v1763_v46  ;;  %v1765_v42 = vpop.f32.mrb[165].mxu0  ;;  %2149 = vst [vmem:[%s3355_s29 + $0x220] sm:$0xff] %v1650_v41  ;;  %v1652_v43 = vpop.f32.mrb[165].mxu1 }
 0x263   : > { %2101 = vst [vmem:[%s3355_s29 + $0xa8] sm:$0xff] %v1765_v42  ;;  %v1767_v1 = vpop.f32.mrb[166].mxu0  ;;  %2150 = vst [vmem:[%s3355_s29 + $0x228] sm:$0xff] %v1652_v43  ;;  %v1654_v44 = vpop.f32.mrb[166].mxu1 }
 0x264   : > { %2126 = vst [vmem:[%s3355_s29 + $0x168] sm:$0xff] %v1767_v1  ;;  %v1769_v3 = vpop.f32.mrb[167].mxu0  ;;  %2174 = vst [vmem:[%s3355_s29 + $0x2e8] sm:$0xff] %v1654_v44  ;;  %v1656_v48 = vpop.f32.mrb[167].mxu1 }
 0x265   : > { %2127 = vst [vmem:[%s3355_s29 + $0x170] sm:$0xff] %v1769_v3  ;;  %2175 = vst [vmem:[%s3355_s29 + $0x2f0] sm:$0xff] %v1656_v48 }
 0x269   : > { %v1773_v49 = vpop.f32.mrb[168].mxu0  ;;  %v1660_v50 = vpop.f32.mrb[168].mxu1 }
 0x26a   : > { %2151 = vst [vmem:[%s3355_s29 + $0x230] sm:$0xff] %v1773_v49  ;;  %v1775_v2 = vpop.f32.mrb[169].mxu0  ;;  %2199 = vst [vmem:[%s3355_s29 + $0x3b0] sm:$0xff] %v1660_v50  ;;  %v1662_v51 = vpop.f32.mrb[169].mxu1 }
 0x26b   : > { %2152 = vst [vmem:[%s3355_s29 + $0x238] sm:$0xff] %v1775_v2  ;;  %v1777_v19 = vpop.f32.mrb[170].mxu0  ;;  %2200 = vst [vmem:[%s3355_s29 + $0x3b8] sm:$0xff] %v1662_v51  ;;  %v1664_v52 = vpop.f32.mrb[170].mxu1 }
 0x26c   : > { %2176 = vst [vmem:[%s3355_s29 + $0x2f8] sm:$0xff] %v1777_v19  ;;  %v1779_v53 = vpop.f32.mrb[171].mxu0  ;;  %2224 = vst [vmem:[%s3355_s29 + $0x478] sm:$0xff] %v1664_v52  ;;  %v1666_v54 = vpop.f32.mrb[171].mxu1 }
 0x26d   : > { %2177 = vst [vmem:[%s3355_s29 + $0x300] sm:$0xff] %v1779_v53  ;;  %2225 = vst [vmem:[%s3355_s29 + $0x480] sm:$0xff] %v1666_v54 }
 0x271   : > { %v1783_v55 = vpop.f32.mrb[172].mxu0  ;;  %v1670_v56 = vpop.f32.mrb[172].mxu1 }
 0x272   : > { %2201 = vst [vmem:[%s3355_s29 + $0x3c0] sm:$0xff] %v1783_v55  ;;  %v1785_v57 = vpop.f32.mrb[173].mxu0  ;;  %2249 = vst [vmem:[%s3355_s29 + $0x540] sm:$0xff] %v1670_v56  ;;  %v1672_v4 = vpop.f32.mrb[173].mxu1 }
 0x273   : > { %2202 = vst [vmem:[%s3355_s29 + $0x3c8] sm:$0xff] %v1785_v57  ;;  %v1787_v24 = vpop.f32.mrb[174].mxu0  ;;  %2250 = vst [vmem:[%s3355_s29 + $0x548] sm:$0xff] %v1672_v4  ;;  %v1674_v58 = vpop.f32.mrb[174].mxu1 }
 0x274   : > { %2226 = vst [vmem:[%s3355_s29 + $0x488] sm:$0xff] %v1787_v24  ;;  %v1789_v59 = vpop.f32.mrb[175].mxu0  ;;  %2274 = vst [vmem:[%s3355_s29 + $0x608] sm:$0xff] %v1674_v58  ;;  %v1676_v61 = vpop.f32.mrb[175].mxu1 }
 0x275   : > { %2227 = vst [vmem:[%s3355_s29 + $0x490] sm:$0xff] %v1789_v59  ;;  %2275 = vst [vmem:[%s3355_s29 + $0x610] sm:$0xff] %v1676_v61 }
 0x279   : > { %v1793_v62 = vpop.f32.mrb[176].mxu0  ;;  %v1680_v63 = vpop.f32.mrb[176].mxu1 }
 0x27a   : > { %2251 = vst [vmem:[%s3355_s29 + $0x550] sm:$0xff] %v1793_v62  ;;  %v1795_v10 = vpop.f32.mrb[177].mxu0  ;;  %2299 = vst [vmem:[%s3355_s29 + $0x6d0] sm:$0xff] %v1680_v63  ;;  %v1682_v5 = vpop.f32.mrb[177].mxu1 }
 0x27b   : > { %2252 = vst [vmem:[%s3355_s29 + $0x558] sm:$0xff] %v1795_v10  ;;  %v1797_v37 = vpop.f32.mrb[178].mxu0  ;;  %2300 = vst [vmem:[%s3355_s29 + $0x6d8] sm:$0xff] %v1682_v5  ;;  %v1684_v6 = vpop.f32.mrb[178].mxu1 }
 0x27c   : > { %2276 = vst [vmem:[%s3355_s29 + $0x618] sm:$0xff] %v1797_v37  ;;  %v1799_v7 = vpop.f32.mrb[179].mxu0  ;;  %2324 = vst [vmem:[%s3355_s29 + $0x798] sm:$0xff] %v1684_v6  ;;  %v1686_v9 = vpop.f32.mrb[179].mxu1 }
 0x27d   : > { %2277 = vst [vmem:[%s3355_s29 + $0x620] sm:$0xff] %v1799_v7  ;;  %2325 = vst [vmem:[%s3355_s29 + $0x7a0] sm:$0xff] %v1686_v9 }
 0x281   : > { %v1803_v11 = vpop.f32.mrb[180].mxu0  ;;  %v1690_v12 = vpop.f32.mrb[180].mxu1 }
 0x282   : > { %2301 = vst [vmem:[%s3355_s29 + $0x6e0] sm:$0xff] %v1803_v11  ;;  %v1805_v13 = vpop.f32.mrb[181].mxu0  ;;  %2349 = vst [vmem:[%s3355_s29 + $0x860] sm:$0xff] %v1690_v12  ;;  %v1692_v14 = vpop.f32.mrb[181].mxu1 }
 0x283   : > { %2302 = vst [vmem:[%s3355_s29 + $0x6e8] sm:$0xff] %v1805_v13  ;;  %v1807_v60 = vpop.f32.mrb[182].mxu0  ;;  %2350 = vst [vmem:[%s3355_s29 + $0x868] sm:$0xff] %v1692_v14  ;;  %v1694_v15 = vpop.f32.mrb[182].mxu1 }
 0x284   : > { %2326 = vst [vmem:[%s3355_s29 + $0x7a8] sm:$0xff] %v1807_v60  ;;  %v1809_v16 = vpop.f32.mrb[183].mxu0  ;;  %2374 = vst [vmem:[%s3355_s29 + $0x928] sm:$0xff] %v1694_v15  ;;  %v1696_v17 = vpop.f32.mrb[183].mxu1 }
 0x285   : > { %2327 = vst [vmem:[%s3355_s29 + $0x7b0] sm:$0xff] %v1809_v16  ;;  %2375 = vst [vmem:[%s3355_s29 + $0x930] sm:$0xff] %v1696_v17 }
 0x289   : > { %v1813_v20 = vpop.f32.mrb[184].mxu0  ;;  %v1700_v21 = vpop.f32.mrb[184].mxu1 }
 0x28a   : > { %2351 = vst [vmem:[%s3355_s29 + $0x870] sm:$0xff] %v1813_v20  ;;  %v1815_v22 = vpop.f32.mrb[185].mxu0  ;;  %2399 = vst [vmem:[%s3355_s29 + $0x9f0] sm:$0xff] %v1700_v21  ;;  %v1702_v23 = vpop.f32.mrb[185].mxu1 }
 0x28b   : > { %2352 = vst [vmem:[%s3355_s29 + $0x878] sm:$0xff] %v1815_v22  ;;  %v1817_v8 = vpop.f32.mrb[186].mxu0  ;;  %2400 = vst [vmem:[%s3355_s29 + $0x9f8] sm:$0xff] %v1702_v23  ;;  %v1704_v25 = vpop.f32.mrb[186].mxu1 }
 0x28c   : > { %2376 = vst [vmem:[%s3355_s29 + $0x938] sm:$0xff] %v1817_v8  ;;  %v1819_v26 = vpop.f32.mrb[187].mxu0  ;;  %2424 = vst [vmem:[%s3355_s29 + $0xab8] sm:$0xff] %v1704_v25  ;;  %v1706_v28 = vpop.f32.mrb[187].mxu1 }
 0x28d   : > { %2377 = vst [vmem:[%s3355_s29 + $0x940] sm:$0xff] %v1819_v26  ;;  %2425 = vst [vmem:[%s3355_s29 + $0xac0] sm:$0xff] %v1706_v28 }
 0x291   : > { %v1823_v0 = vpop.f32.mrb[188].mxu0  ;;  %v1710_v27 = vpop.f32.mrb[188].mxu1 }
 0x292   : > { %2401 = vst [vmem:[%s3355_s29 + $0xa00] sm:$0xff] %v1823_v0  ;;  %v1825_v30 = vpop.f32.mrb[189].mxu0  ;;  %2449 = vst [vmem:[%s3355_s29 + $0xb80] sm:$0xff] %v1710_v27  ;;  %v1712_v31 = vpop.f32.mrb[189].mxu1 }
 0x293   : > { %2402 = vst [vmem:[%s3355_s29 + $0xa08] sm:$0xff] %v1825_v30  ;;  %v1827_v32 = vpop.f32.mrb[190].mxu0  ;;  %2450 = vst [vmem:[%s3355_s29 + $0xb88] sm:$0xff] %v1712_v31  ;;  %v1714_v18 = vpop.f32.mrb[190].mxu1 }
 0x294   : > { %2426 = vst [vmem:[%s3355_s29 + $0xac8] sm:$0xff] %v1827_v32  ;;  %v1829_v33 = vpop.f32.mrb[191].mxu0  ;;  %2474 = vst [vmem:[%s3355_s29 + $0xc48] sm:$0xff] %v1714_v18  ;;  %v1716_v39 = vpop.f32.mrb[191].mxu1 }
 0x295   : > { %2427 = vst [vmem:[%s3355_s29 + $0xad0] sm:$0xff] %v1829_v33  ;;  %2475 = vst [vmem:[%s3355_s29 + $0xc50] sm:$0xff] %v1716_v39 }
 0x299   : > { %v1833_v34 = vpop.f32.mrb[192].mxu0  ;;  %v1720_v35 = vpop.f32.mrb[192].mxu1 }
 0x29a   : > { %2451 = vst [vmem:[%s3355_s29 + $0xb90] sm:$0xff] %v1833_v34  ;;  %v1835_v36 = vpop.f32.mrb[193].mxu0  ;;  %2499 = vst [vmem:[%s3355_s29 + $0xd10] sm:$0xff] %v1720_v35  ;;  %v1722_v45 = vpop.f32.mrb[193].mxu1 }
 0x29b   : > { %2452 = vst [vmem:[%s3355_s29 + $0xb98] sm:$0xff] %v1835_v36  ;;  %v1837_v47 = vpop.f32.mrb[194].mxu0  ;;  %2500 = vst [vmem:[%s3355_s29 + $0xd18] sm:$0xff] %v1722_v45  ;;  %v1724_v38 = vpop.f32.mrb[194].mxu1 }
 0x29c   : > { %2476 = vst [vmem:[%s3355_s29 + $0xc58] sm:$0xff] %v1837_v47  ;;  %v1839_v40 = vpop.f32.mrb[195].mxu0  ;;  %2524 = vst [vmem:[%s3355_s29 + $0xdd8] sm:$0xff] %v1724_v38  ;;  %v1726_v29 = vpop.f32.mrb[195].mxu1 }
 0x29d   : > { %2477 = vst [vmem:[%s3355_s29 + $0xc60] sm:$0xff] %v1839_v40  ;;  %2525 = vst [vmem:[%s3355_s29 + $0xde0] sm:$0xff] %v1726_v29 }
 0x2a1   : > { %v1843_v46 = vpop.f32.mrb[196].mxu0  ;;  %v1886_v41 = vpop.f32.mrb[196].mxu1 }
 0x2a2   : > { %2501 = vst [vmem:[%s3355_s29 + $0xd20] sm:$0xff] %v1843_v46  ;;  %v1845_v42 = vpop.f32.mrb[197].mxu0  ;;  %2102 = vst [vmem:[%s3355_s29 + $0xb0] sm:$0xff] %v1886_v41  ;;  %v1888_v43 = vpop.f32.mrb[197].mxu1 }
 0x2a3   : > { %2502 = vst [vmem:[%s3355_s29 + $0xd28] sm:$0xff] %v1845_v42  ;;  %v1847_v1 = vpop.f32.mrb[198].mxu0  ;;  %2103 = vst [vmem:[%s3355_s29 + $0xb8] sm:$0xff] %v1888_v43  ;;  %v1890_v44 = vpop.f32.mrb[198].mxu1 }
 0x2a4   : > { %2526 = vst [vmem:[%s3355_s29 + $0xde8] sm:$0xff] %v1847_v1  ;;  %v1849_v3 = vpop.f32.mrb[199].mxu0  ;;  %2128 = vst [vmem:[%s3355_s29 + $0x178] sm:$0xff] %v1890_v44  ;;  %v1892_v48 = vpop.f32.mrb[199].mxu1 }
 0x2a5   : > { %2527 = vst [vmem:[%s3355_s29 + $0xdf0] sm:$0xff] %v1849_v3  ;;  %2129 = vst [vmem:[%s3355_s29 + $0x180] sm:$0xff] %v1892_v48 }
 0x2a9   : > { %v2009_v49 = vpop.f32.mrb[200].mxu0  ;;  %v1896_v50 = vpop.f32.mrb[200].mxu1 }
 0x2aa   : > { %2105 = vst.msk [vmem:[%s3355_s29 + $0xc0] sm:$0xff] %vm2104_vm2, %v2009_v49  ;;  %v2792_v2 = vpop.f32.mrb[201].mxu0  ;;  %2153 = vst [vmem:[%s3355_s29 + $0x240] sm:$0xff] %v1896_v50  ;;  %v1898_v51 = vpop.f32.mrb[201].mxu1 }
 0x2ab   : > { %v2012_v19 = vpop.f32.mrb[202].mxu0  ;;  %2154 = vst [vmem:[%s3355_s29 + $0x248] sm:$0xff] %v1898_v51  ;;  %v1900_v52 = vpop.f32.mrb[202].mxu1 }
 0x2ac   : > { %2130 = vst.msk [vmem:[%s3355_s29 + $0x188] sm:$0xff] %vm2104_vm2, %v2012_v19  ;;  %v2793_v53 = vpop.f32.mrb[203].mxu0  ;;  %2178 = vst [vmem:[%s3355_s29 + $0x308] sm:$0xff] %v1900_v52  ;;  %v1902_v54 = vpop.f32.mrb[203].mxu1 }
 0x2ad   : > { %2179 = vst [vmem:[%s3355_s29 + $0x310] sm:$0xff] %v1902_v54 }
 0x2b1   : > { %v2017_v55 = vpop.f32.mrb[204].mxu0  ;;  %v1906_v56 = vpop.f32.mrb[204].mxu1 }
 0x2b2   : > { %2155 = vst.msk [vmem:[%s3355_s29 + $0x250] sm:$0xff] %vm2104_vm2, %v2017_v55  ;;  %v2796_v57 = vpop.f32.mrb[205].mxu0  ;;  %2203 = vst [vmem:[%s3355_s29 + $0x3d0] sm:$0xff] %v1906_v56  ;;  %v1908_v4 = vpop.f32.mrb[205].mxu1 }
 0x2b3   : > { %v2020_v24 = vpop.f32.mrb[206].mxu0  ;;  %2204 = vst [vmem:[%s3355_s29 + $0x3d8] sm:$0xff] %v1908_v4  ;;  %v1910_v58 = vpop.f32.mrb[206].mxu1 }
 0x2b4   : > { %2180 = vst.msk [vmem:[%s3355_s29 + $0x318] sm:$0xff] %vm2104_vm2, %v2020_v24  ;;  %v2797_v59 = vpop.f32.mrb[207].mxu0  ;;  %2228 = vst [vmem:[%s3355_s29 + $0x498] sm:$0xff] %v1910_v58  ;;  %v1912_v61 = vpop.f32.mrb[207].mxu1 }
 0x2b5   : > { %2229 = vst [vmem:[%s3355_s29 + $0x4a0] sm:$0xff] %v1912_v61 }
 0x2b9   : > { %v2025_v62 = vpop.f32.mrb[208].mxu0  ;;  %v1916_v63 = vpop.f32.mrb[208].mxu1 }
 0x2ba   : > { %2205 = vst.msk [vmem:[%s3355_s29 + $0x3e0] sm:$0xff] %vm2104_vm2, %v2025_v62  ;;  %v2800_v10 = vpop.f32.mrb[209].mxu0  ;;  %2253 = vst [vmem:[%s3355_s29 + $0x560] sm:$0xff] %v1916_v63  ;;  %v1918_v5 = vpop.f32.mrb[209].mxu1 }
 0x2bb   : > { %v2028_v37 = vpop.f32.mrb[210].mxu0  ;;  %2254 = vst [vmem:[%s3355_s29 + $0x568] sm:$0xff] %v1918_v5  ;;  %v1920_v6 = vpop.f32.mrb[210].mxu1 }
 0x2bc   : > { %2230 = vst.msk [vmem:[%s3355_s29 + $0x4a8] sm:$0xff] %vm2104_vm2, %v2028_v37  ;;  %v2801_v7 = vpop.f32.mrb[211].mxu0  ;;  %2278 = vst [vmem:[%s3355_s29 + $0x628] sm:$0xff] %v1920_v6  ;;  %v1922_v9 = vpop.f32.mrb[211].mxu1 }
 0x2bd   : > { %2279 = vst [vmem:[%s3355_s29 + $0x630] sm:$0xff] %v1922_v9 }
 0x2c1   : > { %v2033_v11 = vpop.f32.mrb[212].mxu0  ;;  %v1926_v12 = vpop.f32.mrb[212].mxu1 }
 0x2c2   : > { %2255 = vst.msk [vmem:[%s3355_s29 + $0x570] sm:$0xff] %vm2104_vm2, %v2033_v11  ;;  %v2804_v13 = vpop.f32.mrb[213].mxu0  ;;  %2303 = vst [vmem:[%s3355_s29 + $0x6f0] sm:$0xff] %v1926_v12  ;;  %v1928_v14 = vpop.f32.mrb[213].mxu1 }
 0x2c3   : > { %v2036_v60 = vpop.f32.mrb[214].mxu0  ;;  %2304 = vst [vmem:[%s3355_s29 + $0x6f8] sm:$0xff] %v1928_v14  ;;  %v1930_v15 = vpop.f32.mrb[214].mxu1 }
 0x2c4   : > { %2280 = vst.msk [vmem:[%s3355_s29 + $0x638] sm:$0xff] %vm2104_vm2, %v2036_v60  ;;  %v2805_v16 = vpop.f32.mrb[215].mxu0  ;;  %2328 = vst [vmem:[%s3355_s29 + $0x7b8] sm:$0xff] %v1930_v15  ;;  %v1932_v17 = vpop.f32.mrb[215].mxu1 }
 0x2c5   : > { %2329 = vst [vmem:[%s3355_s29 + $0x7c0] sm:$0xff] %v1932_v17 }
 0x2c9   : > { %v2041_v20 = vpop.f32.mrb[216].mxu0  ;;  %v1936_v21 = vpop.f32.mrb[216].mxu1 }
 0x2ca   : > { %2305 = vst.msk [vmem:[%s3355_s29 + $0x700] sm:$0xff] %vm2104_vm2, %v2041_v20  ;;  %v2808_v22 = vpop.f32.mrb[217].mxu0  ;;  %2353 = vst [vmem:[%s3355_s29 + $0x880] sm:$0xff] %v1936_v21  ;;  %v1938_v23 = vpop.f32.mrb[217].mxu1 }
 0x2cb   : > { %v2044_v8 = vpop.f32.mrb[218].mxu0  ;;  %2354 = vst [vmem:[%s3355_s29 + $0x888] sm:$0xff] %v1938_v23  ;;  %v1940_v25 = vpop.f32.mrb[218].mxu1 }
 0x2cc   : > { %2330 = vst.msk [vmem:[%s3355_s29 + $0x7c8] sm:$0xff] %vm2104_vm2, %v2044_v8  ;;  %v2809_v26 = vpop.f32.mrb[219].mxu0  ;;  %2378 = vst [vmem:[%s3355_s29 + $0x948] sm:$0xff] %v1940_v25  ;;  %v1942_v28 = vpop.f32.mrb[219].mxu1 }
 0x2cd   : > { %2379 = vst [vmem:[%s3355_s29 + $0x950] sm:$0xff] %v1942_v28 }
 0x2d1   : > { %v2049_v0 = vpop.f32.mrb[220].mxu0  ;;  %v1946_v27 = vpop.f32.mrb[220].mxu1 }
 0x2d2   : > { %2355 = vst.msk [vmem:[%s3355_s29 + $0x890] sm:$0xff] %vm2104_vm2, %v2049_v0  ;;  %v2812_v30 = vpop.f32.mrb[221].mxu0  ;;  %2403 = vst [vmem:[%s3355_s29 + $0xa10] sm:$0xff] %v1946_v27  ;;  %v1948_v31 = vpop.f32.mrb[221].mxu1 }
 0x2d3   : > { %v2052_v32 = vpop.f32.mrb[222].mxu0  ;;  %2404 = vst [vmem:[%s3355_s29 + $0xa18] sm:$0xff] %v1948_v31  ;;  %v1950_v18 = vpop.f32.mrb[222].mxu1 }
 0x2d4   : > { %2380 = vst.msk [vmem:[%s3355_s29 + $0x958] sm:$0xff] %vm2104_vm2, %v2052_v32  ;;  %v2813_v33 = vpop.f32.mrb[223].mxu0  ;;  %2428 = vst [vmem:[%s3355_s29 + $0xad8] sm:$0xff] %v1950_v18  ;;  %v1952_v39 = vpop.f32.mrb[223].mxu1 }
 0x2d5   : > { %2429 = vst [vmem:[%s3355_s29 + $0xae0] sm:$0xff] %v1952_v39 }
 0x2d9   : > { %v2057_v34 = vpop.f32.mrb[224].mxu0  ;;  %v1956_v35 = vpop.f32.mrb[224].mxu1 }
 0x2da   : > { %2405 = vst.msk [vmem:[%s3355_s29 + $0xa20] sm:$0xff] %vm2104_vm2, %v2057_v34  ;;  %v2816_v36 = vpop.f32.mrb[225].mxu0  ;;  %2453 = vst [vmem:[%s3355_s29 + $0xba0] sm:$0xff] %v1956_v35  ;;  %v1958_v45 = vpop.f32.mrb[225].mxu1 }
 0x2db   : > { %v2060_v47 = vpop.f32.mrb[226].mxu0  ;;  %2454 = vst [vmem:[%s3355_s29 + $0xba8] sm:$0xff] %v1958_v45  ;;  %v1960_v38 = vpop.f32.mrb[226].mxu1 }
 0x2dc   : > { %2430 = vst.msk [vmem:[%s3355_s29 + $0xae8] sm:$0xff] %vm2104_vm2, %v2060_v47  ;;  %v2817_v40 = vpop.f32.mrb[227].mxu0  ;;  %2478 = vst [vmem:[%s3355_s29 + $0xc68] sm:$0xff] %v1960_v38  ;;  %v1962_v29 = vpop.f32.mrb[227].mxu1 }
 0x2dd   : > { %2479 = vst [vmem:[%s3355_s29 + $0xc70] sm:$0xff] %v1962_v29 }
 0x2e1   : > { %v2065_v46 = vpop.f32.mrb[228].mxu0  ;;  %v1966_v41 = vpop.f32.mrb[228].mxu1 }
 0x2e2   : > { %2455 = vst.msk [vmem:[%s3355_s29 + $0xbb0] sm:$0xff] %vm2104_vm2, %v2065_v46  ;;  %v2820_v42 = vpop.f32.mrb[229].mxu0  ;;  %2503 = vst [vmem:[%s3355_s29 + $0xd30] sm:$0xff] %v1966_v41  ;;  %v1968_v43 = vpop.f32.mrb[229].mxu1 }
 0x2e3   : > { %v2068_v1 = vpop.f32.mrb[230].mxu0  ;;  %2504 = vst [vmem:[%s3355_s29 + $0xd38] sm:$0xff] %v1968_v43  ;;  %v1970_v44 = vpop.f32.mrb[230].mxu1 }
 0x2e4   : > { %2480 = vst.msk [vmem:[%s3355_s29 + $0xc78] sm:$0xff] %vm2104_vm2, %v2068_v1  ;;  %v2821_v3 = vpop.f32.mrb[231].mxu0  ;;  %2528 = vst [vmem:[%s3355_s29 + $0xdf8] sm:$0xff] %v1970_v44  ;;  %v1972_v48 = vpop.f32.mrb[231].mxu1 }
 0x2e5   : > { %2529 = vst [vmem:[%s3355_s29 + $0xe00] sm:$0xff] %v1972_v48 }
 0x2e9   : > { %v2073_v49 = vpop.f32.mrb[232].mxu0 }
 0x2ea   : > { %2505 = vst.msk [vmem:[%s3355_s29 + $0xd40] sm:$0xff] %vm2104_vm2, %v2073_v49  ;;  %v2824_v50 = vpop.f32.mrb[233].mxu0 }
 0x2eb   : > { %v2076_v2 = vpop.f32.mrb[234].mxu0 }
 0x2ec   : > { %2530 = vst.msk [vmem:[%s3355_s29 + $0xe08] sm:$0xff] %vm2104_vm2, %v2076_v2  ;;  %v2825_v51 = vpop.f32.mrb[235].mxu0 }
 0x2ed   : > { %2967 = shalt.err (!%p2964_p6)
}
 0x2ee   : > { %s2968_s18 = scalar_lea.hbm %s4052_s6, 57600  ;;  %s2972_s24 = scalar_lea.hbm %s4110_s2, 115200 }
 0x2ef   : > { %p2969_p7 = scmp.ne.s32.totalorder %s4052_s6, %s2968_s18  ;;  %p2973_p0 = scmp.lt.u32.totalorder %s4052_s6, %s4110_s2 }
 0x2f0   : > { %p2974_p2 = scmp.lt.u32.totalorder %s2972_s24, %s2968_s18  ;;  %p2976_p8 = scmp.lt.u32.totalorder %s2968_s18, %s4052_s6 }
 0x2f1   : > { %p2970_p9 = pnand %p2969_p7, %p4122_p10 }
 0x2f2   : > { %p2975_p4 = por %p2974_p2, %p2973_p0 }
 0x2f3   : > { %p2971_p12 = pneg %p2970_p9 }
 0x2f4   : > { %p2977_p11 = por %p2976_p8, %p2975_p4 }
 0x2f6   : > { %p2978_p13 = pnand %p2977_p11, %p2971_p12 }
 0x2f8   : > { %2981 = shalt.err (!%p2978_p13)
}
 0x2f9   : > { %s3045_s27 = smov 3200   ;;  %s3046_s28 = smov 200  }
 0x2fa   : > { %2838 = dma.vmem_to_hbm [thread:$0]  (%p4122_p10), %s4054_s3, 57600, %s4052_s6, %s4062_s12, %s3045_s27, %s3045_s27, %s3046_s28  }
 0x2fb PF: > { %p2851_p1 = scmp.ge.s32.totalorder %s3036_s14, 2  ;;  %s2563_s29 = sand.u32 1, %s3016_s9  }
 0x2fc   : > { %p4123_p3 = scmp.ne.s32.totalorder %s4116_s21, 0  ;;  %s2564_s30 = scalar_lea.sflag [#allocation4], %s2563_s29 }
 0x2fe   : > { %p2845_p5 = pnand %p2851_p1, %p4123_p3 }
 0x300   : > { %3011 = dma.done.wait (!%p2845_p5), %s2564_s30, 57600  }
 0x301   : > { %3013 = vsyncadd (!%p2845_p5), %s2564_s30, 4294909696  ;;  %s16_s14 = sadd.s32 1, %s3036_s14   ;;  %s4124_s9 = smov %s3020_s10 }
 0x302   : > { %p13_p6 = scmp.ge.s32.totalorder %s16_s14, 4   ;;  %s4125_s10 = smov %s3024_s11 }
 0x303   : > { %s4126_s11 = smov %s3115_s22  ;;  %s4127_s12 = smov %s3032_s13 }
 0x304   : > { %s4128_s13 = smov %s4130_s17  ;;  %15 = sbr.rel (!%p13_p6) target bundleno = 5 (0x5), region = 69 }
 0x30b   :  { %2569 = vsyncpa [#allocation3], 1 }
 0x30c   :  { %2571 = vsyncpa [#allocation3 + $0x1], 1 }
 0x30d   :  { %2572 = vsyncpa [#allocation4], 1 }
 0x30e   :  { %2574 = vsyncpa [#allocation4 + $0x1], 1 }

</bundles_post_ra>
